<compile_context>
chip_gen: v6e
topology: v6e:2x2x1
jax: 0.10.0
libtpu: 0.0.40
codegen_flags: <defaults>
</compile_context>

<pallas_src>
import functools
import math
import string

import jax
import jax.numpy as jnp
from jax import lax
from jax.experimental import pallas as pl
from jax.experimental.pallas import tpu as pltpu

# ---- module-level constants mirroring the PyTorch script -------------------
all_letters = string.ascii_letters + " .,;'"
n_letters = len(all_letters)          # 57
n_hidden = 128
n_categories = 18                     # output_size (names-classification demo)

IN_PAD = 128                          # n_letters (57) padded to one lane group
HID = n_hidden                        # 128, lane aligned
OUT_PAD = 128                         # n_categories (18) padded to one lane group
COL_PAD = HID + OUT_PAD               # 256 fused columns [hidden | logits]
NEG = -1e9                            # "minus infinity" bias for padded logit cols
T_MAX = 16                            # fixed max name length (kills recompiles)
B_BLK = 8                             # sequences per grid step (sublane aligned)


def name_to_tensor(name):
    """JAX equivalent of nameToTensor: one-hot, shape (len(name), 1, n_letters)."""
    t = jnp.zeros((len(name), 1, n_letters), dtype=jnp.float32)
    for i, letter in enumerate(name):
        idx = all_letters.find(letter)
        t = t.at[i, 0, idx].set(1.0)
    return t


# ---- Pallas kernel ----------------------------------------------------------
def rnn_batch_kernel(lens_ref, x_ref, wx_ref, wh_ref, b_ref, out_ref, xz_ref,
                     *, t_max):
    """Whole padded sequence batch in one kernel invocation.

    lens_ref: (B_BLK, 1)  int32 true sequence lengths (0 for padding rows)
    x_ref   : (T_MAX, B_BLK, IN_PAD)  padded one-hot inputs
    wx_ref  : (IN_PAD, COL_PAD)  input-rows of fused [i2h | i2o] weights
    wh_ref  : (HID,   COL_PAD)   hidden-rows of fused [i2h | i2o] weights
    b_ref   : (1, COL_PAD)       fused bias, padded logit cols = -1e9
    out_ref : (B_BLK, COL_PAD)   cols [0:HID)=final hidden, [HID:)=log-softmax
    xz_ref  : (T_MAX, B_BLK, COL_PAD) VMEM scratch for the hoisted x-side matmul
    """
    b_blk = x_ref.shape[1]

    # --- hoisted input-side matmul + bias: ONE MXU op, off the serial chain ---
    x2 = x_ref[...].reshape(t_max * b_blk, IN_PAD)
    xz = jnp.dot(x2, wx_ref[...], preferred_element_type=jnp.float32) + b_ref[...]
    xz_ref[...] = xz.reshape(t_max, b_blk, COL_PAD)

    # hoisted weight / length loads (loop is unrolled; avoid per-step ref loads)
    wh_hid = wh_ref[:, :HID]                  # (128, 128) recurrent weights
    lens = lens_ref[...]                      # (B, 1) int32

    h0 = jnp.zeros((b_blk, HID), jnp.float32)
    z_out0 = jnp.full((b_blk, OUT_PAD), NEG, jnp.float32)  # safe for len == 0

    def step(t, carry):
        h_prev, h, z_out_last = carry
        z = xz_ref[t]                         # (B, COL_PAD)  x_t @ Wx + b
        h_new = z[:, :HID] + jnp.dot(h, wh_hid,
                                     preferred_element_type=jnp.float32)
        valid = t < lens                      # (B, 1)
        last = t == (lens - 1)                # capture x-side logits of last step
        z_out_last = jnp.where(last, z[:, HID:], z_out_last)
        h_prev = jnp.where(valid, h, h_prev)  # hidden entering the last step
        h = jnp.where(valid, h_new, h)
        return h_prev, h, z_out_last

    h_prev, h_final, z_out_last = lax.fori_loop(
        0, t_max, step, (h0, h0, z_out0), unroll=True)

    # logits ONLY at the end: last-step combined = [x_{n-1}, h_{n-2}]
    wh_out = wh_ref[:, HID:]
    logits = z_out_last + jnp.dot(h_prev, wh_out,
                                  preferred_element_type=jnp.float32)

    # log_softmax over padded logits (padded cols are ~-1e9 -> exp == 0)
    m = jnp.max(logits, axis=1, keepdims=True)
    sh = logits - m
    lse = jnp.log(jnp.sum(jnp.exp(sh), axis=1, keepdims=True))

    # fused, lane-dense output block (single output DMA)
    out_ref[:, :HID] = h_final
    out_ref[:, HID:] = sh - lse


@jax.jit
def rnn_batched(x, lens, wx, wh, b):
    """One pallas_call over a whole batch of padded sequences."""
    b_pad = x.shape[1]
    nb = b_pad // B_BLK
    kernel = functools.partial(rnn_batch_kernel, t_max=T_MAX)

    flops = b_pad * (2 * T_MAX * IN_PAD * COL_PAD
                     + 2 * T_MAX * HID * HID
                     + 2 * HID * OUT_PAD)
    bytes_accessed = 4 * (x.size + lens.size + wx.size + wh.size + b.size
                          + b_pad * COL_PAD)

    out = pl.pallas_call(
        kernel,
        out_shape=jax.ShapeDtypeStruct((b_pad, COL_PAD), jnp.float32),
        grid=(nb,),
        in_specs=[
            pl.BlockSpec((B_BLK, 1), lambda i: (i, 0)),
            pl.BlockSpec((T_MAX, B_BLK, IN_PAD), lambda i: (0, i, 0)),
            pl.BlockSpec((IN_PAD, COL_PAD), lambda i: (0, 0)),   # weights stay
            pl.BlockSpec((HID, COL_PAD), lambda i: (0, 0)),      # VMEM-resident
            pl.BlockSpec((1, COL_PAD), lambda i: (0, 0)),
        ],
        out_specs=pl.BlockSpec((B_BLK, COL_PAD), lambda i: (i, 0)),
        scratch_shapes=[pltpu.VMEM((T_MAX, B_BLK, COL_PAD), jnp.float32)],
        compiler_params=pltpu.CompilerParams(
            dimension_semantics=("parallel",)),
        cost_estimate=pl.CostEstimate(
            flops=flops, transcendentals=b_pad * OUT_PAD,
            bytes_accessed=bytes_accessed),
    )(lens, x, wx, wh, b)
    return out


# ---- parameter init / packing ----------------------------------------------
def init_params(key, input_size, hidden_size, output_size):
    """Deterministic init matching nn.Linear default (uniform +/- 1/sqrt(fan_in))."""
    fan_in = input_size + hidden_size
    bound = 1.0 / math.sqrt(fan_in)
    k1, k2, k3, k4 = jax.random.split(key, 4)
    # stored as (in_features, out_features) == transpose of torch weight
    w_ih = jax.random.uniform(k1, (fan_in, hidden_size), jnp.float32, -bound, bound)
    b_ih = jax.random.uniform(k2, (1, hidden_size), jnp.float32, -bound, bound)
    w_io = jax.random.uniform(k3, (fan_in, output_size), jnp.float32, -bound, bound)
    b_io = jax.random.uniform(k4, (1, output_size), jnp.float32, -bound, bound)
    return (w_ih, b_ih, w_io, b_io)


def pack_params(params, input_size, hidden_size, output_size):
    """One-time packing: split into input/hidden rows, fuse i2h|i2o, pad lanes."""
    w_ih, b_ih, w_io, b_io = params

    wx = jnp.zeros((IN_PAD, COL_PAD), jnp.float32)
    wx = wx.at[:input_size, :hidden_size].set(w_ih[:input_size])
    wx = wx.at[:input_size, HID:HID + output_size].set(w_io[:input_size])

    wh = jnp.zeros((HID, COL_PAD), jnp.float32)
    wh = wh.at[:hidden_size, :hidden_size].set(w_ih[input_size:])
    wh = wh.at[:hidden_size, HID:HID + output_size].set(w_io[input_size:])

    b = jnp.zeros((1, COL_PAD), jnp.float32)
    b = b.at[:, :hidden_size].set(b_ih)
    b = b.at[:, HID:HID + output_size].set(b_io)
    b = b.at[:, HID + output_size:].set(NEG)   # padded logits -> exp() == 0
    return wx, wh, b


def pad_batch(names):
    """Names -> (T_MAX, B_pad, IN_PAD) one-hot batch + (B_pad, 1) int32 lengths."""
    n = len(names)
    b_pad = max(B_BLK, ((n + B_BLK - 1) // B_BLK) * B_BLK)
    x = jnp.zeros((T_MAX, b_pad, IN_PAD), jnp.float32)
    lens = jnp.zeros((b_pad, 1), jnp.int32)
    for bi, name in enumerate(names):
        assert len(name) <= T_MAX, "name longer than fixed T_MAX"
        lens = lens.at[bi, 0].set(len(name))
        for t, letter in enumerate(name):
            x = x.at[t, bi, all_letters.find(letter)].set(1.0)
    return x, lens


# ---- pure-JAX reference ------------------------------------------------------
def rnn_forward_ref(inp, hidden, params):
    """Reference for one step of the PyTorch module forward."""
    w_ih, b_ih, w_io, b_io = params
    combined = jnp.concatenate([inp, hidden], axis=1)
    new_h = combined @ w_ih + b_ih
    logits = combined @ w_io + b_io
    out = logits - jax.scipy.special.logsumexp(logits, axis=1, keepdims=True)
    return out, new_h


if __name__ == "__main__":
    key = jax.random.PRNGKey(0)
    params = init_params(key, n_letters, n_hidden, n_categories)
    wx, wh, b = pack_params(params, n_letters, n_hidden, n_categories)

    # batch of names (incl. the original "Albert"); padded rows have length 0
    names = ["Albert", "Jones", "O'Neal"]
    x, lens = pad_batch(names)                 # (16, 8, 128), (8, 1)

    out = rnn_batched(x, lens, wx, wh, b)      # (8, 256)
    out = jax.block_until_ready(out)

    # reference: per-step loop in pure JAX with the original (unpadded) params
    ok = True
    for bi, name in enumerate(names):
        inp_seq = name_to_tensor(name)
        hidden_ref = jnp.zeros((1, n_hidden), jnp.float32)
        out_ref = None
        for t in range(len(name)):
            out_ref, hidden_ref = rnn_forward_ref(inp_seq[t], hidden_ref, params)

        k_hidden = out[bi:bi + 1, :HID]
        k_logp = out[bi:bi + 1, HID:HID + n_categories]
        assert k_logp.shape == (1, n_categories)
        assert k_hidden.shape == (1, n_hidden)
        ok &= bool(jnp.allclose(k_logp, out_ref, atol=1e-4, rtol=1e-4))
        ok &= bool(jnp.allclose(k_hidden, hidden_ref, atol=1e-4, rtol=1e-4))

    assert ok
    print("KERNEL_OK")
</pallas_src>

<mosaic_0001>
module attributes {stable_mosaic.version = 11 : i64} {
  func.func @rnn_batch_kernel(%arg0: i32, %arg1: memref<8x1xi32, #tpu.memory_space<vmem>>, %arg2: memref<16x8x128xf32, #tpu.memory_space<vmem>>, %arg3: memref<128x256xf32, #tpu.memory_space<vmem>>, %arg4: memref<128x256xf32, #tpu.memory_space<vmem>>, %arg5: memref<1x256xf32, #tpu.memory_space<vmem>>, %arg6: memref<8x256xf32, #tpu.memory_space<vmem>>, %arg7: memref<16x8x256xf32, #tpu.memory_space<vmem>>) attributes {dimension_semantics = [#tpu.dimension_semantics<parallel>], iteration_bounds = array<i64: 1>, scalar_prefetch = 0 : i64, scratch_operands = 1 : i64, tpu.core_type = #tpu.core_type<tc>, window_params = [{transform_indices = @transform_0, window_bounds = array<i64: 8, 1>}, {transform_indices = @transform_1, window_bounds = array<i64: 16, 8, 128>}, {pipeline_mode = #tpu.pipeline_mode<synchronous>, transform_indices = @transform_2, window_bounds = array<i64: 128, 256>}, {pipeline_mode = #tpu.pipeline_mode<synchronous>, transform_indices = @transform_3, window_bounds = array<i64: 128, 256>}, {pipeline_mode = #tpu.pipeline_mode<synchronous>, transform_indices = @transform_4, window_bounds = array<i64: 1, 256>}, {transform_indices = @transform_5, window_bounds = array<i64: 8, 256>}]} {
    %c0 = arith.constant 0 : index
    %c0_0 = arith.constant 0 : index
    %c0_1 = arith.constant 0 : index
    %0 = vector.load %arg2[%c0, %c0_0, %c0_1] : memref<16x8x128xf32, #tpu.memory_space<vmem>>, vector<16x8x128xf32>
    %1 = vector.shape_cast %0 : vector<16x8x128xf32> to vector<128x128xf32>
    %c0_2 = arith.constant 0 : index
    %c0_3 = arith.constant 0 : index
    %2 = vector.load %arg3[%c0_2, %c0_3] : memref<128x256xf32, #tpu.memory_space<vmem>>, vector<128x256xf32>
    %cst = arith.constant dense<0.000000e+00> : vector<128x256xf32>
    %3 = tpu.matmul %1, %2, %cst {dimension_numbers = #tpu.dot_dimension_numbers<[1], [0], [0], [1], [0, 0, 1, 1], [], []>} : vector<128x128xf32>, vector<128x256xf32>, vector<128x256xf32> -> vector<128x256xf32>
    %c0_4 = arith.constant 0 : index
    %c0_5 = arith.constant 0 : index
    %4 = vector.load %arg5[%c0_4, %c0_5] : memref<1x256xf32, #tpu.memory_space<vmem>>, vector<1x256xf32>
    %5 = vector.broadcast %4 : vector<1x256xf32> to vector<128x256xf32>
    %6 = arith.addf %3, %5 : vector<128x256xf32>
    %7 = vector.shape_cast %6 : vector<128x256xf32> to vector<16x8x256xf32>
    %c0_6 = arith.constant 0 : index
    %c0_7 = arith.constant 0 : index
    %c0_8 = arith.constant 0 : index
    %8 = vector.load %arg7[%c0_6, %c0_7, %c0_8] : memref<16x8x256xf32, #tpu.memory_space<vmem>>, vector<16x8x256xf32>
    tpu.vector_store %arg7[%c0_6, %c0_7, %c0_8], %7 {strides = array<i32>} : memref<16x8x256xf32, #tpu.memory_space<vmem>>, vector<16x8x256xf32>,
    %c0_9 = arith.constant 0 : index
    %c0_10 = arith.constant 0 : index
    %9 = vector.load %arg4[%c0_9, %c0_10] : memref<128x256xf32, #tpu.memory_space<vmem>>, vector<128x128xf32>
    %c0_11 = arith.constant 0 : index
    %c0_12 = arith.constant 0 : index
    %10 = vector.load %arg1[%c0_11, %c0_12] : memref<8x1xi32, #tpu.memory_space<vmem>>, vector<8x1xi32>
    %cst_13 = arith.constant 0.000000e+00 : f32
    %11 = vector.broadcast %cst_13 : f32 to vector<8x128xf32>
    %cst_14 = arith.constant -1.000000e+09 : f32
    %12 = vector.broadcast %cst_14 : f32 to vector<8x128xf32>
    %c0_i32 = arith.constant 0 : i32
    %13 = arith.index_cast %c0_i32 : i32 to index
    %c0_15 = arith.constant 0 : index
    %c0_16 = arith.constant 0 : index
    %14 = vector.load %arg7[%13, %c0_15, %c0_16] : memref<16x8x256xf32, #tpu.memory_space<vmem>>, vector<1x8x256xf32>
    %15 = vector.shape_cast %14 : vector<1x8x256xf32> to vector<8x256xf32>
    %16 = vector.extract_strided_slice %15 {offsets = [0, 0], sizes = [8, 128], strides = [1, 1]} : vector<8x256xf32> to vector<8x128xf32>
    %cst_17 = arith.constant dense<0.000000e+00> : vector<8x128xf32>
    %17 = tpu.matmul %11, %9, %cst_17 {dimension_numbers = #tpu.dot_dimension_numbers<[1], [0], [0], [1], [0, 0, 1, 1], [], []>} : vector<8x128xf32>, vector<128x128xf32>, vector<8x128xf32> -> vector<8x128xf32>
    %18 = arith.addf %16, %17 : vector<8x128xf32>
    %19 = vector.broadcast %c0_i32 : i32 to vector<8x1xi32>
    %20 = arith.cmpi slt, %19, %10 : vector<8x1xi32>
    %c1_i32 = arith.constant 1 : i32
    %21 = vector.broadcast %c1_i32 : i32 to vector<8x1xi32>
    %22 = arith.subi %10, %21 : vector<8x1xi32>
    %23 = vector.broadcast %c0_i32 : i32 to vector<8x1xi32>
    %24 = arith.cmpi eq, %23, %22 : vector<8x1xi32>
    %25 = vector.extract_strided_slice %15 {offsets = [0, 128], sizes = [8, 128], strides = [1, 1]} : vector<8x256xf32> to vector<8x128xf32>
    %26 = vector.shape_cast %24 : vector<8x1xi1> to vector<8x1xi1>
    %27 = vector.broadcast %26 : vector<8x1xi1> to vector<8x128xi1>
    %28 = arith.select %27, %25, %12 : vector<8x128xi1>, vector<8x128xf32>
    %29 = vector.shape_cast %20 : vector<8x1xi1> to vector<8x1xi1>
    %30 = vector.broadcast %29 : vector<8x1xi1> to vector<8x128xi1>
    %31 = arith.select %30, %11, %11 : vector<8x128xi1>, vector<8x128xf32>
    %32 = vector.shape_cast %20 : vector<8x1xi1> to vector<8x1xi1>
    %33 = vector.broadcast %32 : vector<8x1xi1> to vector<8x128xi1>
    %34 = arith.select %33, %18, %11 : vector<8x128xi1>, vector<8x128xf32>
    %c1_i32_18 = arith.constant 1 : i32
    %35 = arith.index_cast %c1_i32_18 : i32 to index
    %c0_19 = arith.constant 0 : index
    %c0_20 = arith.constant 0 : index
    %36 = vector.load %arg7[%35, %c0_19, %c0_20] : memref<16x8x256xf32, #tpu.memory_space<vmem>>, vector<1x8x256xf32>
    %37 = vector.shape_cast %36 : vector<1x8x256xf32> to vector<8x256xf32>
    %38 = vector.extract_strided_slice %37 {offsets = [0, 0], sizes = [8, 128], strides = [1, 1]} : vector<8x256xf32> to vector<8x128xf32>
    %cst_21 = arith.constant dense<0.000000e+00> : vector<8x128xf32>
    %39 = tpu.matmul %34, %9, %cst_21 {dimension_numbers = #tpu.dot_dimension_numbers<[1], [0], [0], [1], [0, 0, 1, 1], [], []>} : vector<8x128xf32>, vector<128x128xf32>, vector<8x128xf32> -> vector<8x128xf32>
    %40 = arith.addf %38, %39 : vector<8x128xf32>
    %41 = vector.broadcast %c1_i32_18 : i32 to vector<8x1xi32>
    %42 = arith.cmpi slt, %41, %10 : vector<8x1xi32>
    %c1_i32_22 = arith.constant 1 : i32
    %43 = vector.broadcast %c1_i32_22 : i32 to vector<8x1xi32>
    %44 = arith.subi %10, %43 : vector<8x1xi32>
    %45 = vector.broadcast %c1_i32_18 : i32 to vector<8x1xi32>
    %46 = arith.cmpi eq, %45, %44 : vector<8x1xi32>
    %47 = vector.extract_strided_slice %37 {offsets = [0, 128], sizes = [8, 128], strides = [1, 1]} : vector<8x256xf32> to vector<8x128xf32>
    %48 = vector.shape_cast %46 : vector<8x1xi1> to vector<8x1xi1>
    %49 = vector.broadcast %48 : vector<8x1xi1> to vector<8x128xi1>
    %50 = arith.select %49, %47, %28 : vector<8x128xi1>, vector<8x128xf32>
    %51 = vector.shape_cast %42 : vector<8x1xi1> to vector<8x1xi1>
    %52 = vector.broadcast %51 : vector<8x1xi1> to vector<8x128xi1>
    %53 = arith.select %52, %34, %31 : vector<8x128xi1>, vector<8x128xf32>
    %54 = vector.shape_cast %42 : vector<8x1xi1> to vector<8x1xi1>
    %55 = vector.broadcast %54 : vector<8x1xi1> to vector<8x128xi1>
    %56 = arith.select %55, %40, %34 : vector<8x128xi1>, vector<8x128xf32>
    %c2_i32 = arith.constant 2 : i32
    %57 = arith.index_cast %c2_i32 : i32 to index
    %c0_23 = arith.constant 0 : index
    %c0_24 = arith.constant 0 : index
    %58 = vector.load %arg7[%57, %c0_23, %c0_24] : memref<16x8x256xf32, #tpu.memory_space<vmem>>, vector<1x8x256xf32>
    %59 = vector.shape_cast %58 : vector<1x8x256xf32> to vector<8x256xf32>
    %60 = vector.extract_strided_slice %59 {offsets = [0, 0], sizes = [8, 128], strides = [1, 1]} : vector<8x256xf32> to vector<8x128xf32>
    %cst_25 = arith.constant dense<0.000000e+00> : vector<8x128xf32>
    %61 = tpu.matmul %56, %9, %cst_25 {dimension_numbers = #tpu.dot_dimension_numbers<[1], [0], [0], [1], [0, 0, 1, 1], [], []>} : vector<8x128xf32>, vector<128x128xf32>, vector<8x128xf32> -> vector<8x128xf32>
    %62 = arith.addf %60, %61 : vector<8x128xf32>
    %63 = vector.broadcast %c2_i32 : i32 to vector<8x1xi32>
    %64 = arith.cmpi slt, %63, %10 : vector<8x1xi32>
    %c1_i32_26 = arith.constant 1 : i32
    %65 = vector.broadcast %c1_i32_26 : i32 to vector<8x1xi32>
    %66 = arith.subi %10, %65 : vector<8x1xi32>
    %67 = vector.broadcast %c2_i32 : i32 to vector<8x1xi32>
    %68 = arith.cmpi eq, %67, %66 : vector<8x1xi32>
    %69 = vector.extract_strided_slice %59 {offsets = [0, 128], sizes = [8, 128], strides = [1, 1]} : vector<8x256xf32> to vector<8x128xf32>
    %70 = vector.shape_cast %68 : vector<8x1xi1> to vector<8x1xi1>
    %71 = vector.broadcast %70 : vector<8x1xi1> to vector<8x128xi1>
    %72 = arith.select %71, %69, %50 : vector<8x128xi1>, vector<8x128xf32>
    %73 = vector.shape_cast %64 : vector<8x1xi1> to vector<8x1xi1>
    %74 = vector.broadcast %73 : vector<8x1xi1> to vector<8x128xi1>
    %75 = arith.select %74, %56, %53 : vector<8x128xi1>, vector<8x128xf32>
    %76 = vector.shape_cast %64 : vector<8x1xi1> to vector<8x1xi1>
    %77 = vector.broadcast %76 : vector<8x1xi1> to vector<8x128xi1>
    %78 = arith.select %77, %62, %56 : vector<8x128xi1>, vector<8x128xf32>
    %c3_i32 = arith.constant 3 : i32
    %79 = arith.index_cast %c3_i32 : i32 to index
    %c0_27 = arith.constant 0 : index
    %c0_28 = arith.constant 0 : index
    %80 = vector.load %arg7[%79, %c0_27, %c0_28] : memref<16x8x256xf32, #tpu.memory_space<vmem>>, vector<1x8x256xf32>
    %81 = vector.shape_cast %80 : vector<1x8x256xf32> to vector<8x256xf32>
    %82 = vector.extract_strided_slice %81 {offsets = [0, 0], sizes = [8, 128], strides = [1, 1]} : vector<8x256xf32> to vector<8x128xf32>
    %cst_29 = arith.constant dense<0.000000e+00> : vector<8x128xf32>
    %83 = tpu.matmul %78, %9, %cst_29 {dimension_numbers = #tpu.dot_dimension_numbers<[1], [0], [0], [1], [0, 0, 1, 1], [], []>} : vector<8x128xf32>, vector<128x128xf32>, vector<8x128xf32> -> vector<8x128xf32>
    %84 = arith.addf %82, %83 : vector<8x128xf32>
    %85 = vector.broadcast %c3_i32 : i32 to vector<8x1xi32>
    %86 = arith.cmpi slt, %85, %10 : vector<8x1xi32>
    %c1_i32_30 = arith.constant 1 : i32
    %87 = vector.broadcast %c1_i32_30 : i32 to vector<8x1xi32>
    %88 = arith.subi %10, %87 : vector<8x1xi32>
    %89 = vector.broadcast %c3_i32 : i32 to vector<8x1xi32>
    %90 = arith.cmpi eq, %89, %88 : vector<8x1xi32>
    %91 = vector.extract_strided_slice %81 {offsets = [0, 128], sizes = [8, 128], strides = [1, 1]} : vector<8x256xf32> to vector<8x128xf32>
    %92 = vector.shape_cast %90 : vector<8x1xi1> to vector<8x1xi1>
    %93 = vector.broadcast %92 : vector<8x1xi1> to vector<8x128xi1>
    %94 = arith.select %93, %91, %72 : vector<8x128xi1>, vector<8x128xf32>
    %95 = vector.shape_cast %86 : vector<8x1xi1> to vector<8x1xi1>
    %96 = vector.broadcast %95 : vector<8x1xi1> to vector<8x128xi1>
    %97 = arith.select %96, %78, %75 : vector<8x128xi1>, vector<8x128xf32>
    %98 = vector.shape_cast %86 : vector<8x1xi1> to vector<8x1xi1>
    %99 = vector.broadcast %98 : vector<8x1xi1> to vector<8x128xi1>
    %100 = arith.select %99, %84, %78 : vector<8x128xi1>, vector<8x128xf32>
    %c4_i32 = arith.constant 4 : i32
    %101 = arith.index_cast %c4_i32 : i32 to index
    %c0_31 = arith.constant 0 : index
    %c0_32 = arith.constant 0 : index
    %102 = vector.load %arg7[%101, %c0_31, %c0_32] : memref<16x8x256xf32, #tpu.memory_space<vmem>>, vector<1x8x256xf32>
    %103 = vector.shape_cast %102 : vector<1x8x256xf32> to vector<8x256xf32>
    %104 = vector.extract_strided_slice %103 {offsets = [0, 0], sizes = [8, 128], strides = [1, 1]} : vector<8x256xf32> to vector<8x128xf32>
    %cst_33 = arith.constant dense<0.000000e+00> : vector<8x128xf32>
    %105 = tpu.matmul %100, %9, %cst_33 {dimension_numbers = #tpu.dot_dimension_numbers<[1], [0], [0], [1], [0, 0, 1, 1], [], []>} : vector<8x128xf32>, vector<128x128xf32>, vector<8x128xf32> -> vector<8x128xf32>
    %106 = arith.addf %104, %105 : vector<8x128xf32>
    %107 = vector.broadcast %c4_i32 : i32 to vector<8x1xi32>
    %108 = arith.cmpi slt, %107, %10 : vector<8x1xi32>
    %c1_i32_34 = arith.constant 1 : i32
    %109 = vector.broadcast %c1_i32_34 : i32 to vector<8x1xi32>
    %110 = arith.subi %10, %109 : vector<8x1xi32>
    %111 = vector.broadcast %c4_i32 : i32 to vector<8x1xi32>
    %112 = arith.cmpi eq, %111, %110 : vector<8x1xi32>
    %113 = vector.extract_strided_slice %103 {offsets = [0, 128], sizes = [8, 128], strides = [1, 1]} : vector<8x256xf32> to vector<8x128xf32>
    %114 = vector.shape_cast %112 : vector<8x1xi1> to vector<8x1xi1>
    %115 = vector.broadcast %114 : vector<8x1xi1> to vector<8x128xi1>
    %116 = arith.select %115, %113, %94 : vector<8x128xi1>, vector<8x128xf32>
    %117 = vector.shape_cast %108 : vector<8x1xi1> to vector<8x1xi1>
    %118 = vector.broadcast %117 : vector<8x1xi1> to vector<8x128xi1>
    %119 = arith.select %118, %100, %97 : vector<8x128xi1>, vector<8x128xf32>
    %120 = vector.shape_cast %108 : vector<8x1xi1> to vector<8x1xi1>
    %121 = vector.broadcast %120 : vector<8x1xi1> to vector<8x128xi1>
    %122 = arith.select %121, %106, %100 : vector<8x128xi1>, vector<8x128xf32>
    %c5_i32 = arith.constant 5 : i32
    %123 = arith.index_cast %c5_i32 : i32 to index
    %c0_35 = arith.constant 0 : index
    %c0_36 = arith.constant 0 : index
    %124 = vector.load %arg7[%123, %c0_35, %c0_36] : memref<16x8x256xf32, #tpu.memory_space<vmem>>, vector<1x8x256xf32>
    %125 = vector.shape_cast %124 : vector<1x8x256xf32> to vector<8x256xf32>
    %126 = vector.extract_strided_slice %125 {offsets = [0, 0], sizes = [8, 128], strides = [1, 1]} : vector<8x256xf32> to vector<8x128xf32>
    %cst_37 = arith.constant dense<0.000000e+00> : vector<8x128xf32>
    %127 = tpu.matmul %122, %9, %cst_37 {dimension_numbers = #tpu.dot_dimension_numbers<[1], [0], [0], [1], [0, 0, 1, 1], [], []>} : vector<8x128xf32>, vector<128x128xf32>, vector<8x128xf32> -> vector<8x128xf32>
    %128 = arith.addf %126, %127 : vector<8x128xf32>
    %129 = vector.broadcast %c5_i32 : i32 to vector<8x1xi32>
    %130 = arith.cmpi slt, %129, %10 : vector<8x1xi32>
    %c1_i32_38 = arith.constant 1 : i32
    %131 = vector.broadcast %c1_i32_38 : i32 to vector<8x1xi32>
    %132 = arith.subi %10, %131 : vector<8x1xi32>
    %133 = vector.broadcast %c5_i32 : i32 to vector<8x1xi32>
    %134 = arith.cmpi eq, %133, %132 : vector<8x1xi32>
    %135 = vector.extract_strided_slice %125 {offsets = [0, 128], sizes = [8, 128], strides = [1, 1]} : vector<8x256xf32> to vector<8x128xf32>
    %136 = vector.shape_cast %134 : vector<8x1xi1> to vector<8x1xi1>
    %137 = vector.broadcast %136 : vector<8x1xi1> to vector<8x128xi1>
    %138 = arith.select %137, %135, %116 : vector<8x128xi1>, vector<8x128xf32>
    %139 = vector.shape_cast %130 : vector<8x1xi1> to vector<8x1xi1>
    %140 = vector.broadcast %139 : vector<8x1xi1> to vector<8x128xi1>
    %141 = arith.select %140, %122, %119 : vector<8x128xi1>, vector<8x128xf32>
    %142 = vector.shape_cast %130 : vector<8x1xi1> to vector<8x1xi1>
    %143 = vector.broadcast %142 : vector<8x1xi1> to vector<8x128xi1>
    %144 = arith.select %143, %128, %122 : vector<8x128xi1>, vector<8x128xf32>
    %c6_i32 = arith.constant 6 : i32
    %145 = arith.index_cast %c6_i32 : i32 to index
    %c0_39 = arith.constant 0 : index
    %c0_40 = arith.constant 0 : index
    %146 = vector.load %arg7[%145, %c0_39, %c0_40] : memref<16x8x256xf32, #tpu.memory_space<vmem>>, vector<1x8x256xf32>
    %147 = vector.shape_cast %146 : vector<1x8x256xf32> to vector<8x256xf32>
    %148 = vector.extract_strided_slice %147 {offsets = [0, 0], sizes = [8, 128], strides = [1, 1]} : vector<8x256xf32> to vector<8x128xf32>
    %cst_41 = arith.constant dense<0.000000e+00> : vector<8x128xf32>
    %149 = tpu.matmul %144, %9, %cst_41 {dimension_numbers = #tpu.dot_dimension_numbers<[1], [0], [0], [1], [0, 0, 1, 1], [], []>} : vector<8x128xf32>, vector<128x128xf32>, vector<8x128xf32> -> vector<8x128xf32>
    %150 = arith.addf %148, %149 : vector<8x128xf32>
    %151 = vector.broadcast %c6_i32 : i32 to vector<8x1xi32>
    %152 = arith.cmpi slt, %151, %10 : vector<8x1xi32>
    %c1_i32_42 = arith.constant 1 : i32
    %153 = vector.broadcast %c1_i32_42 : i32 to vector<8x1xi32>
    %154 = arith.subi %10, %153 : vector<8x1xi32>
    %155 = vector.broadcast %c6_i32 : i32 to vector<8x1xi32>
    %156 = arith.cmpi eq, %155, %154 : vector<8x1xi32>
    %157 = vector.extract_strided_slice %147 {offsets = [0, 128], sizes = [8, 128], strides = [1, 1]} : vector<8x256xf32> to vector<8x128xf32>
    %158 = vector.shape_cast %156 : vector<8x1xi1> to vector<8x1xi1>
    %159 = vector.broadcast %158 : vector<8x1xi1> to vector<8x128xi1>
    %160 = arith.select %159, %157, %138 : vector<8x128xi1>, vector<8x128xf32>
    %161 = vector.shape_cast %152 : vector<8x1xi1> to vector<8x1xi1>
    %162 = vector.broadcast %161 : vector<8x1xi1> to vector<8x128xi1>
    %163 = arith.select %162, %144, %141 : vector<8x128xi1>, vector<8x128xf32>
    %164 = vector.shape_cast %152 : vector<8x1xi1> to vector<8x1xi1>
    %165 = vector.broadcast %164 : vector<8x1xi1> to vector<8x128xi1>
    %166 = arith.select %165, %150, %144 : vector<8x128xi1>, vector<8x128xf32>
    %c7_i32 = arith.constant 7 : i32
    %167 = arith.index_cast %c7_i32 : i32 to index
    %c0_43 = arith.constant 0 : index
    %c0_44 = arith.constant 0 : index
    %168 = vector.load %arg7[%167, %c0_43, %c0_44] : memref<16x8x256xf32, #tpu.memory_space<vmem>>, vector<1x8x256xf32>
    %169 = vector.shape_cast %168 : vector<1x8x256xf32> to vector<8x256xf32>
    %170 = vector.extract_strided_slice %169 {offsets = [0, 0], sizes = [8, 128], strides = [1, 1]} : vector<8x256xf32> to vector<8x128xf32>
    %cst_45 = arith.constant dense<0.000000e+00> : vector<8x128xf32>
    %171 = tpu.matmul %166, %9, %cst_45 {dimension_numbers = #tpu.dot_dimension_numbers<[1], [0], [0], [1], [0, 0, 1, 1], [], []>} : vector<8x128xf32>, vector<128x128xf32>, vector<8x128xf32> -> vector<8x128xf32>
    %172 = arith.addf %170, %171 : vector<8x128xf32>
    %173 = vector.broadcast %c7_i32 : i32 to vector<8x1xi32>
    %174 = arith.cmpi slt, %173, %10 : vector<8x1xi32>
    %c1_i32_46 = arith.constant 1 : i32
    %175 = vector.broadcast %c1_i32_46 : i32 to vector<8x1xi32>
    %176 = arith.subi %10, %175 : vector<8x1xi32>
    %177 = vector.broadcast %c7_i32 : i32 to vector<8x1xi32>
    %178 = arith.cmpi eq, %177, %176 : vector<8x1xi32>
    %179 = vector.extract_strided_slice %169 {offsets = [0, 128], sizes = [8, 128], strides = [1, 1]} : vector<8x256xf32> to vector<8x128xf32>
    %180 = vector.shape_cast %178 : vector<8x1xi1> to vector<8x1xi1>
    %181 = vector.broadcast %180 : vector<8x1xi1> to vector<8x128xi1>
    %182 = arith.select %181, %179, %160 : vector<8x128xi1>, vector<8x128xf32>
    %183 = vector.shape_cast %174 : vector<8x1xi1> to vector<8x1xi1>
    %184 = vector.broadcast %183 : vector<8x1xi1> to vector<8x128xi1>
    %185 = arith.select %184, %166, %163 : vector<8x128xi1>, vector<8x128xf32>
    %186 = vector.shape_cast %174 : vector<8x1xi1> to vector<8x1xi1>
    %187 = vector.broadcast %186 : vector<8x1xi1> to vector<8x128xi1>
    %188 = arith.select %187, %172, %166 : vector<8x128xi1>, vector<8x128xf32>
    %c8_i32 = arith.constant 8 : i32
    %189 = arith.index_cast %c8_i32 : i32 to index
    %c0_47 = arith.constant 0 : index
    %c0_48 = arith.constant 0 : index
    %190 = vector.load %arg7[%189, %c0_47, %c0_48] : memref<16x8x256xf32, #tpu.memory_space<vmem>>, vector<1x8x256xf32>
    %191 = vector.shape_cast %190 : vector<1x8x256xf32> to vector<8x256xf32>
    %192 = vector.extract_strided_slice %191 {offsets = [0, 0], sizes = [8, 128], strides = [1, 1]} : vector<8x256xf32> to vector<8x128xf32>
    %cst_49 = arith.constant dense<0.000000e+00> : vector<8x128xf32>
    %193 = tpu.matmul %188, %9, %cst_49 {dimension_numbers = #tpu.dot_dimension_numbers<[1], [0], [0], [1], [0, 0, 1, 1], [], []>} : vector<8x128xf32>, vector<128x128xf32>, vector<8x128xf32> -> vector<8x128xf32>
    %194 = arith.addf %192, %193 : vector<8x128xf32>
    %195 = vector.broadcast %c8_i32 : i32 to vector<8x1xi32>
    %196 = arith.cmpi slt, %195, %10 : vector<8x1xi32>
    %c1_i32_50 = arith.constant 1 : i32
    %197 = vector.broadcast %c1_i32_50 : i32 to vector<8x1xi32>
    %198 = arith.subi %10, %197 : vector<8x1xi32>
    %199 = vector.broadcast %c8_i32 : i32 to vector<8x1xi32>
    %200 = arith.cmpi eq, %199, %198 : vector<8x1xi32>
    %201 = vector.extract_strided_slice %191 {offsets = [0, 128], sizes = [8, 128], strides = [1, 1]} : vector<8x256xf32> to vector<8x128xf32>
    %202 = vector.shape_cast %200 : vector<8x1xi1> to vector<8x1xi1>
    %203 = vector.broadcast %202 : vector<8x1xi1> to vector<8x128xi1>
    %204 = arith.select %203, %201, %182 : vector<8x128xi1>, vector<8x128xf32>
    %205 = vector.shape_cast %196 : vector<8x1xi1> to vector<8x1xi1>
    %206 = vector.broadcast %205 : vector<8x1xi1> to vector<8x128xi1>
    %207 = arith.select %206, %188, %185 : vector<8x128xi1>, vector<8x128xf32>
    %208 = vector.shape_cast %196 : vector<8x1xi1> to vector<8x1xi1>
    %209 = vector.broadcast %208 : vector<8x1xi1> to vector<8x128xi1>
    %210 = arith.select %209, %194, %188 : vector<8x128xi1>, vector<8x128xf32>
    %c9_i32 = arith.constant 9 : i32
    %211 = arith.index_cast %c9_i32 : i32 to index
    %c0_51 = arith.constant 0 : index
    %c0_52 = arith.constant 0 : index
    %212 = vector.load %arg7[%211, %c0_51, %c0_52] : memref<16x8x256xf32, #tpu.memory_space<vmem>>, vector<1x8x256xf32>
    %213 = vector.shape_cast %212 : vector<1x8x256xf32> to vector<8x256xf32>
    %214 = vector.extract_strided_slice %213 {offsets = [0, 0], sizes = [8, 128], strides = [1, 1]} : vector<8x256xf32> to vector<8x128xf32>
    %cst_53 = arith.constant dense<0.000000e+00> : vector<8x128xf32>
    %215 = tpu.matmul %210, %9, %cst_53 {dimension_numbers = #tpu.dot_dimension_numbers<[1], [0], [0], [1], [0, 0, 1, 1], [], []>} : vector<8x128xf32>, vector<128x128xf32>, vector<8x128xf32> -> vector<8x128xf32>
    %216 = arith.addf %214, %215 : vector<8x128xf32>
    %217 = vector.broadcast %c9_i32 : i32 to vector<8x1xi32>
    %218 = arith.cmpi slt, %217, %10 : vector<8x1xi32>
    %c1_i32_54 = arith.constant 1 : i32
    %219 = vector.broadcast %c1_i32_54 : i32 to vector<8x1xi32>
    %220 = arith.subi %10, %219 : vector<8x1xi32>
    %221 = vector.broadcast %c9_i32 : i32 to vector<8x1xi32>
    %222 = arith.cmpi eq, %221, %220 : vector<8x1xi32>
    %223 = vector.extract_strided_slice %213 {offsets = [0, 128], sizes = [8, 128], strides = [1, 1]} : vector<8x256xf32> to vector<8x128xf32>
    %224 = vector.shape_cast %222 : vector<8x1xi1> to vector<8x1xi1>
    %225 = vector.broadcast %224 : vector<8x1xi1> to vector<8x128xi1>
    %226 = arith.select %225, %223, %204 : vector<8x128xi1>, vector<8x128xf32>
    %227 = vector.shape_cast %218 : vector<8x1xi1> to vector<8x1xi1>
    %228 = vector.broadcast %227 : vector<8x1xi1> to vector<8x128xi1>
    %229 = arith.select %228, %210, %207 : vector<8x128xi1>, vector<8x128xf32>
    %230 = vector.shape_cast %218 : vector<8x1xi1> to vector<8x1xi1>
    %231 = vector.broadcast %230 : vector<8x1xi1> to vector<8x128xi1>
    %232 = arith.select %231, %216, %210 : vector<8x128xi1>, vector<8x128xf32>
    %c10_i32 = arith.constant 10 : i32
    %233 = arith.index_cast %c10_i32 : i32 to index
    %c0_55 = arith.constant 0 : index
    %c0_56 = arith.constant 0 : index
    %234 = vector.load %arg7[%233, %c0_55, %c0_56] : memref<16x8x256xf32, #tpu.memory_space<vmem>>, vector<1x8x256xf32>
    %235 = vector.shape_cast %234 : vector<1x8x256xf32> to vector<8x256xf32>
    %236 = vector.extract_strided_slice %235 {offsets = [0, 0], sizes = [8, 128], strides = [1, 1]} : vector<8x256xf32> to vector<8x128xf32>
    %cst_57 = arith.constant dense<0.000000e+00> : vector<8x128xf32>
    %237 = tpu.matmul %232, %9, %cst_57 {dimension_numbers = #tpu.dot_dimension_numbers<[1], [0], [0], [1], [0, 0, 1, 1], [], []>} : vector<8x128xf32>, vector<128x128xf32>, vector<8x128xf32> -> vector<8x128xf32>
    %238 = arith.addf %236, %237 : vector<8x128xf32>
    %239 = vector.broadcast %c10_i32 : i32 to vector<8x1xi32>
    %240 = arith.cmpi slt, %239, %10 : vector<8x1xi32>
    %c1_i32_58 = arith.constant 1 : i32
    %241 = vector.broadcast %c1_i32_58 : i32 to vector<8x1xi32>
    %242 = arith.subi %10, %241 : vector<8x1xi32>
    %243 = vector.broadcast %c10_i32 : i32 to vector<8x1xi32>
    %244 = arith.cmpi eq, %243, %242 : vector<8x1xi32>
    %245 = vector.extract_strided_slice %235 {offsets = [0, 128], sizes = [8, 128], strides = [1, 1]} : vector<8x256xf32> to vector<8x128xf32>
    %246 = vector.shape_cast %244 : vector<8x1xi1> to vector<8x1xi1>
    %247 = vector.broadcast %246 : vector<8x1xi1> to vector<8x128xi1>
    %248 = arith.select %247, %245, %226 : vector<8x128xi1>, vector<8x128xf32>
    %249 = vector.shape_cast %240 : vector<8x1xi1> to vector<8x1xi1>
    %250 = vector.broadcast %249 : vector<8x1xi1> to vector<8x128xi1>
    %251 = arith.select %250, %232, %229 : vector<8x128xi1>, vector<8x128xf32>
    %252 = vector.shape_cast %240 : vector<8x1xi1> to vector<8x1xi1>
    %253 = vector.broadcast %252 : vector<8x1xi1> to vector<8x128xi1>
    %254 = arith.select %253, %238, %232 : vector<8x128xi1>, vector<8x128xf32>
    %c11_i32 = arith.constant 11 : i32
    %255 = arith.index_cast %c11_i32 : i32 to index
    %c0_59 = arith.constant 0 : index
    %c0_60 = arith.constant 0 : index
    %256 = vector.load %arg7[%255, %c0_59, %c0_60] : memref<16x8x256xf32, #tpu.memory_space<vmem>>, vector<1x8x256xf32>
    %257 = vector.shape_cast %256 : vector<1x8x256xf32> to vector<8x256xf32>
    %258 = vector.extract_strided_slice %257 {offsets = [0, 0], sizes = [8, 128], strides = [1, 1]} : vector<8x256xf32> to vector<8x128xf32>
    %cst_61 = arith.constant dense<0.000000e+00> : vector<8x128xf32>
    %259 = tpu.matmul %254, %9, %cst_61 {dimension_numbers = #tpu.dot_dimension_numbers<[1], [0], [0], [1], [0, 0, 1, 1], [], []>} : vector<8x128xf32>, vector<128x128xf32>, vector<8x128xf32> -> vector<8x128xf32>
    %260 = arith.addf %258, %259 : vector<8x128xf32>
    %261 = vector.broadcast %c11_i32 : i32 to vector<8x1xi32>
    %262 = arith.cmpi slt, %261, %10 : vector<8x1xi32>
    %c1_i32_62 = arith.constant 1 : i32
    %263 = vector.broadcast %c1_i32_62 : i32 to vector<8x1xi32>
    %264 = arith.subi %10, %263 : vector<8x1xi32>
    %265 = vector.broadcast %c11_i32 : i32 to vector<8x1xi32>
    %266 = arith.cmpi eq, %265, %264 : vector<8x1xi32>
    %267 = vector.extract_strided_slice %257 {offsets = [0, 128], sizes = [8, 128], strides = [1, 1]} : vector<8x256xf32> to vector<8x128xf32>
    %268 = vector.shape_cast %266 : vector<8x1xi1> to vector<8x1xi1>
    %269 = vector.broadcast %268 : vector<8x1xi1> to vector<8x128xi1>
    %270 = arith.select %269, %267, %248 : vector<8x128xi1>, vector<8x128xf32>
    %271 = vector.shape_cast %262 : vector<8x1xi1> to vector<8x1xi1>
    %272 = vector.broadcast %271 : vector<8x1xi1> to vector<8x128xi1>
    %273 = arith.select %272, %254, %251 : vector<8x128xi1>, vector<8x128xf32>
    %274 = vector.shape_cast %262 : vector<8x1xi1> to vector<8x1xi1>
    %275 = vector.broadcast %274 : vector<8x1xi1> to vector<8x128xi1>
    %276 = arith.select %275, %260, %254 : vector<8x128xi1>, vector<8x128xf32>
    %c12_i32 = arith.constant 12 : i32
    %277 = arith.index_cast %c12_i32 : i32 to index
    %c0_63 = arith.constant 0 : index
    %c0_64 = arith.constant 0 : index
    %278 = vector.load %arg7[%277, %c0_63, %c0_64] : memref<16x8x256xf32, #tpu.memory_space<vmem>>, vector<1x8x256xf32>
    %279 = vector.shape_cast %278 : vector<1x8x256xf32> to vector<8x256xf32>
    %280 = vector.extract_strided_slice %279 {offsets = [0, 0], sizes = [8, 128], strides = [1, 1]} : vector<8x256xf32> to vector<8x128xf32>
    %cst_65 = arith.constant dense<0.000000e+00> : vector<8x128xf32>
    %281 = tpu.matmul %276, %9, %cst_65 {dimension_numbers = #tpu.dot_dimension_numbers<[1], [0], [0], [1], [0, 0, 1, 1], [], []>} : vector<8x128xf32>, vector<128x128xf32>, vector<8x128xf32> -> vector<8x128xf32>
    %282 = arith.addf %280, %281 : vector<8x128xf32>
    %283 = vector.broadcast %c12_i32 : i32 to vector<8x1xi32>
    %284 = arith.cmpi slt, %283, %10 : vector<8x1xi32>
    %c1_i32_66 = arith.constant 1 : i32
    %285 = vector.broadcast %c1_i32_66 : i32 to vector<8x1xi32>
    %286 = arith.subi %10, %285 : vector<8x1xi32>
    %287 = vector.broadcast %c12_i32 : i32 to vector<8x1xi32>
    %288 = arith.cmpi eq, %287, %286 : vector<8x1xi32>
    %289 = vector.extract_strided_slice %279 {offsets = [0, 128], sizes = [8, 128], strides = [1, 1]} : vector<8x256xf32> to vector<8x128xf32>
    %290 = vector.shape_cast %288 : vector<8x1xi1> to vector<8x1xi1>
    %291 = vector.broadcast %290 : vector<8x1xi1> to vector<8x128xi1>
    %292 = arith.select %291, %289, %270 : vector<8x128xi1>, vector<8x128xf32>
    %293 = vector.shape_cast %284 : vector<8x1xi1> to vector<8x1xi1>
    %294 = vector.broadcast %293 : vector<8x1xi1> to vector<8x128xi1>
    %295 = arith.select %294, %276, %273 : vector<8x128xi1>, vector<8x128xf32>
    %296 = vector.shape_cast %284 : vector<8x1xi1> to vector<8x1xi1>
    %297 = vector.broadcast %296 : vector<8x1xi1> to vector<8x128xi1>
    %298 = arith.select %297, %282, %276 : vector<8x128xi1>, vector<8x128xf32>
    %c13_i32 = arith.constant 13 : i32
    %299 = arith.index_cast %c13_i32 : i32 to index
    %c0_67 = arith.constant 0 : index
    %c0_68 = arith.constant 0 : index
    %300 = vector.load %arg7[%299, %c0_67, %c0_68] : memref<16x8x256xf32, #tpu.memory_space<vmem>>, vector<1x8x256xf32>
    %301 = vector.shape_cast %300 : vector<1x8x256xf32> to vector<8x256xf32>
    %302 = vector.extract_strided_slice %301 {offsets = [0, 0], sizes = [8, 128], strides = [1, 1]} : vector<8x256xf32> to vector<8x128xf32>
    %cst_69 = arith.constant dense<0.000000e+00> : vector<8x128xf32>
    %303 = tpu.matmul %298, %9, %cst_69 {dimension_numbers = #tpu.dot_dimension_numbers<[1], [0], [0], [1], [0, 0, 1, 1], [], []>} : vector<8x128xf32>, vector<128x128xf32>, vector<8x128xf32> -> vector<8x128xf32>
    %304 = arith.addf %302, %303 : vector<8x128xf32>
    %305 = vector.broadcast %c13_i32 : i32 to vector<8x1xi32>
    %306 = arith.cmpi slt, %305, %10 : vector<8x1xi32>
    %c1_i32_70 = arith.constant 1 : i32
    %307 = vector.broadcast %c1_i32_70 : i32 to vector<8x1xi32>
    %308 = arith.subi %10, %307 : vector<8x1xi32>
    %309 = vector.broadcast %c13_i32 : i32 to vector<8x1xi32>
    %310 = arith.cmpi eq, %309, %308 : vector<8x1xi32>
    %311 = vector.extract_strided_slice %301 {offsets = [0, 128], sizes = [8, 128], strides = [1, 1]} : vector<8x256xf32> to vector<8x128xf32>
    %312 = vector.shape_cast %310 : vector<8x1xi1> to vector<8x1xi1>
    %313 = vector.broadcast %312 : vector<8x1xi1> to vector<8x128xi1>
    %314 = arith.select %313, %311, %292 : vector<8x128xi1>, vector<8x128xf32>
    %315 = vector.shape_cast %306 : vector<8x1xi1> to vector<8x1xi1>
    %316 = vector.broadcast %315 : vector<8x1xi1> to vector<8x128xi1>
    %317 = arith.select %316, %298, %295 : vector<8x128xi1>, vector<8x128xf32>
    %318 = vector.shape_cast %306 : vector<8x1xi1> to vector<8x1xi1>
    %319 = vector.broadcast %318 : vector<8x1xi1> to vector<8x128xi1>
    %320 = arith.select %319, %304, %298 : vector<8x128xi1>, vector<8x128xf32>
    %c14_i32 = arith.constant 14 : i32
    %321 = arith.index_cast %c14_i32 : i32 to index
    %c0_71 = arith.constant 0 : index
    %c0_72 = arith.constant 0 : index
    %322 = vector.load %arg7[%321, %c0_71, %c0_72] : memref<16x8x256xf32, #tpu.memory_space<vmem>>, vector<1x8x256xf32>
    %323 = vector.shape_cast %322 : vector<1x8x256xf32> to vector<8x256xf32>
    %324 = vector.extract_strided_slice %323 {offsets = [0, 0], sizes = [8, 128], strides = [1, 1]} : vector<8x256xf32> to vector<8x128xf32>
    %cst_73 = arith.constant dense<0.000000e+00> : vector<8x128xf32>
    %325 = tpu.matmul %320, %9, %cst_73 {dimension_numbers = #tpu.dot_dimension_numbers<[1], [0], [0], [1], [0, 0, 1, 1], [], []>} : vector<8x128xf32>, vector<128x128xf32>, vector<8x128xf32> -> vector<8x128xf32>
    %326 = arith.addf %324, %325 : vector<8x128xf32>
    %327 = vector.broadcast %c14_i32 : i32 to vector<8x1xi32>
    %328 = arith.cmpi slt, %327, %10 : vector<8x1xi32>
    %c1_i32_74 = arith.constant 1 : i32
    %329 = vector.broadcast %c1_i32_74 : i32 to vector<8x1xi32>
    %330 = arith.subi %10, %329 : vector<8x1xi32>
    %331 = vector.broadcast %c14_i32 : i32 to vector<8x1xi32>
    %332 = arith.cmpi eq, %331, %330 : vector<8x1xi32>
    %333 = vector.extract_strided_slice %323 {offsets = [0, 128], sizes = [8, 128], strides = [1, 1]} : vector<8x256xf32> to vector<8x128xf32>
    %334 = vector.shape_cast %332 : vector<8x1xi1> to vector<8x1xi1>
    %335 = vector.broadcast %334 : vector<8x1xi1> to vector<8x128xi1>
    %336 = arith.select %335, %333, %314 : vector<8x128xi1>, vector<8x128xf32>
    %337 = vector.shape_cast %328 : vector<8x1xi1> to vector<8x1xi1>
    %338 = vector.broadcast %337 : vector<8x1xi1> to vector<8x128xi1>
    %339 = arith.select %338, %320, %317 : vector<8x128xi1>, vector<8x128xf32>
    %340 = vector.shape_cast %328 : vector<8x1xi1> to vector<8x1xi1>
    %341 = vector.broadcast %340 : vector<8x1xi1> to vector<8x128xi1>
    %342 = arith.select %341, %326, %320 : vector<8x128xi1>, vector<8x128xf32>
    %c15_i32 = arith.constant 15 : i32
    %343 = arith.index_cast %c15_i32 : i32 to index
    %c0_75 = arith.constant 0 : index
    %c0_76 = arith.constant 0 : index
    %344 = vector.load %arg7[%343, %c0_75, %c0_76] : memref<16x8x256xf32, #tpu.memory_space<vmem>>, vector<1x8x256xf32>
    %345 = vector.shape_cast %344 : vector<1x8x256xf32> to vector<8x256xf32>
    %346 = vector.extract_strided_slice %345 {offsets = [0, 0], sizes = [8, 128], strides = [1, 1]} : vector<8x256xf32> to vector<8x128xf32>
    %cst_77 = arith.constant dense<0.000000e+00> : vector<8x128xf32>
    %347 = tpu.matmul %342, %9, %cst_77 {dimension_numbers = #tpu.dot_dimension_numbers<[1], [0], [0], [1], [0, 0, 1, 1], [], []>} : vector<8x128xf32>, vector<128x128xf32>, vector<8x128xf32> -> vector<8x128xf32>
    %348 = arith.addf %346, %347 : vector<8x128xf32>
    %349 = vector.broadcast %c15_i32 : i32 to vector<8x1xi32>
    %350 = arith.cmpi slt, %349, %10 : vector<8x1xi32>
    %c1_i32_78 = arith.constant 1 : i32
    %351 = vector.broadcast %c1_i32_78 : i32 to vector<8x1xi32>
    %352 = arith.subi %10, %351 : vector<8x1xi32>
    %353 = vector.broadcast %c15_i32 : i32 to vector<8x1xi32>
    %354 = arith.cmpi eq, %353, %352 : vector<8x1xi32>
    %355 = vector.extract_strided_slice %345 {offsets = [0, 128], sizes = [8, 128], strides = [1, 1]} : vector<8x256xf32> to vector<8x128xf32>
    %356 = vector.shape_cast %354 : vector<8x1xi1> to vector<8x1xi1>
    %357 = vector.broadcast %356 : vector<8x1xi1> to vector<8x128xi1>
    %358 = arith.select %357, %355, %336 : vector<8x128xi1>, vector<8x128xf32>
    %359 = vector.shape_cast %350 : vector<8x1xi1> to vector<8x1xi1>
    %360 = vector.broadcast %359 : vector<8x1xi1> to vector<8x128xi1>
    %361 = arith.select %360, %342, %339 : vector<8x128xi1>, vector<8x128xf32>
    %362 = vector.shape_cast %350 : vector<8x1xi1> to vector<8x1xi1>
    %363 = vector.broadcast %362 : vector<8x1xi1> to vector<8x128xi1>
    %364 = arith.select %363, %348, %342 : vector<8x128xi1>, vector<8x128xf32>
    %c16_i32 = arith.constant 16 : i32
    %c0_79 = arith.constant 0 : index
    %c128 = arith.constant 128 : index
    %365 = vector.load %arg4[%c0_79, %c128] : memref<128x256xf32, #tpu.memory_space<vmem>>, vector<128x128xf32>
    %cst_80 = arith.constant dense<0.000000e+00> : vector<8x128xf32>
    %366 = tpu.matmul %361, %365, %cst_80 {dimension_numbers = #tpu.dot_dimension_numbers<[1], [0], [0], [1], [0, 0, 1, 1], [], []>} : vector<8x128xf32>, vector<128x128xf32>, vector<8x128xf32> -> vector<8x128xf32>
    %367 = arith.addf %358, %366 : vector<8x128xf32>
    %cst_81 = arith.constant dense<0xFF800000> : vector<8xf32>
    %368 = vector.multi_reduction <maximumf>, %367, %cst_81 [1] : vector<8x128xf32> to vector<8xf32>
    %369 = vector.shape_cast %368 : vector<8xf32> to vector<8x1xf32>
    %370 = vector.broadcast %369 : vector<8x1xf32> to vector<8x128xf32>
    %371 = arith.subf %367, %370 : vector<8x128xf32>
    %372 = math.exp %371 : vector<8x128xf32>
    %cst_82 = arith.constant dense<0.000000e+00> : vector<8xf32>
    %373 = vector.multi_reduction <add>, %372, %cst_82 [1] : vector<8x128xf32> to vector<8xf32>
    %374 = vector.shape_cast %373 : vector<8xf32> to vector<8x1xf32>
    %375 = math.log %374 : vector<8x1xf32>
    %c0_83 = arith.constant 0 : index
    %c0_84 = arith.constant 0 : index
    %376 = vector.load %arg6[%c0_83, %c0_84] : memref<8x256xf32, #tpu.memory_space<vmem>>, vector<8x128xf32>
    tpu.vector_store %arg6[%c0_83, %c0_84], %364 {strides = array<i32>} : memref<8x256xf32, #tpu.memory_space<vmem>>, vector<8x128xf32>,
    %377 = vector.broadcast %375 : vector<8x1xf32> to vector<8x128xf32>
    %378 = arith.subf %371, %377 : vector<8x128xf32>
    %c0_85 = arith.constant 0 : index
    %c128_86 = arith.constant 128 : index
    %379 = vector.load %arg6[%c0_85, %c128_86] : memref<8x256xf32, #tpu.memory_space<vmem>>, vector<8x128xf32>
    tpu.vector_store %arg6[%c0_85, %c128_86], %378 {strides = array<i32>} : memref<8x256xf32, #tpu.memory_space<vmem>>, vector<8x128xf32>,
    return
  }
  func.func @transform_0(%arg0: i32) -> (i32, i32) {
    %c0_i32 = arith.constant 0 : i32
    %c0_i32_0 = arith.constant 0 : i32
    return %arg0, %c0_i32 : i32, i32
  }
  func.func @transform_1(%arg0: i32) -> (i32, i32, i32) {
    %c0_i32 = arith.constant 0 : i32
    %c0_i32_0 = arith.constant 0 : i32
    %c0_i32_1 = arith.constant 0 : i32
    return %c0_i32, %arg0, %c0_i32_0 : i32, i32, i32
  }
  func.func @transform_2(%arg0: i32) -> (i32, i32) {
    %c0_i32 = arith.constant 0 : i32
    %c0_i32_0 = arith.constant 0 : i32
    %c0_i32_1 = arith.constant 0 : i32
    return %c0_i32, %c0_i32_0 : i32, i32
  }
  func.func @transform_3(%arg0: i32) -> (i32, i32) {
    %c0_i32 = arith.constant 0 : i32
    %c0_i32_0 = arith.constant 0 : i32
    %c0_i32_1 = arith.constant 0 : i32
    return %c0_i32, %c0_i32_0 : i32, i32
  }
  func.func @transform_4(%arg0: i32) -> (i32, i32) {
    %c0_i32 = arith.constant 0 : i32
    %c0_i32_0 = arith.constant 0 : i32
    %c0_i32_1 = arith.constant 0 : i32
    return %c0_i32, %c0_i32_0 : i32, i32
  }
  func.func @transform_5(%arg0: i32) -> (i32, i32) {
    %c0_i32 = arith.constant 0 : i32
    %c0_i32_0 = arith.constant 0 : i32
    return %arg0, %c0_i32 : i32, i32
  }
}

</mosaic_0001>

<bundles_post_ra>
// kernel: rnn_batched.1
= control target key start
LH: loop header
LB: loop body
LE: loop exit
PB: predicated region body
PF: predicated region fallthrough
CT: control target
= control target key end

     0   :  { %10 = vsyncpa [#allocation4], 0  ;;  %s3898_s0 = inlined_call_operand.vmem [shape: s32[8,1], index: 0, kind: input, shape index: {}]   ;;  %s3899_s1 = inlined_call_operand.hbm [shape: f32[16,8,128], index: 1, kind: input, shape index: {}]   ;;  %s3900_s2 = inlined_call_operand.hbm [shape: f32[128,256], index: 2, kind: input, shape index: {}]   ;;  %s3901_s3 = inlined_call_operand.hbm [shape: f32[128,256], index: 3, kind: input, shape index: {}]   ;;  %s3902_s4 = inlined_call_operand.vmem [shape: f32[1,256], index: 4, kind: input, shape index: {}]   ;;  %s3903_s5 = inlined_call_operand.hbm [shape: f32[8,256], index: 5, kind: output, shape index: {}]  }
   0x1   :  { %11 = vsyncpa [#allocation7], 0 }
   0x2   :  { %12 = vsyncpa [#allocation5], 0  ;;  %s2875_s18 = smov [#allocation6]  }
   0x3   :  { %s32_s19 = sshll.u32 %s2875_s18, 4  ;;  %s33_s19 = int_to_ptr.vmem [resolvable:$true] %s32_s19 }
   0x4   :  { %s2797_s20 = scalar_lea.vmem %s33_s19, 4096  ;;  %p2802_p1 = scmp.lt.s32.totalorder %s33_s19, %s33_s19 }
   0x5   :  { %p2798_p0 = scmp.ne.s32.totalorder %s33_s19, %s2797_s20  ;;  %p2803_p2 = scmp.lt.s32.totalorder %s2797_s20, %s2797_s20 }
   0x7   :  { %p2804_p3 = por %p2803_p2, %p2802_p1 }
   0x9   :  { %p2805_p4 = pnand %p2804_p3, %p2798_p0 }
   0xb   :  { %2808 = shalt.err (!%p2805_p4)
}
   0xc   :  { %s2876_s21 = smov 256   ;;  %s2877_s22 = smov 16  }
   0xd   :  { %38 = dma.hbm_to_vmem [thread:$0]  %s3900_s2, 4096, %s33_s19, [#allocation7], %s2876_s21, %s2876_s21, %s2877_s22  }
   0xe   :  { %s2878_s25 = smov [#allocation3]  }
   0xf   :  { %s20_s26 = sshll.u32 %s2878_s25, 4  ;;  %s21_s26 = int_to_ptr.vmem [resolvable:$true] %s20_s26 }
  0x10   :  { %s2817_s27 = scalar_lea.vmem %s21_s26, 2048  ;;  %p2822_p6 = scmp.lt.s32.totalorder %s21_s26, %s21_s26 }
  0x11   :  { %p2818_p5 = scmp.ne.s32.totalorder %s21_s26, %s2817_s27  ;;  %p2823_p7 = scmp.lt.s32.totalorder %s2817_s27, %s2817_s27 }
  0x13   :  { %p2824_p8 = por %p2823_p7, %p2822_p6 }
  0x15   :  { %p2825_p9 = pnand %p2824_p8, %p2818_p5 }
  0x17   :  { %2828 = shalt.err (!%p2825_p9)
}
  0x18   :  { %s2879_s28 = smov 128   ;;  %s2880_s29 = smov 8  }
  0x19   :  { %26 = dma.hbm_to_vmem [thread:$0]  %s3899_s1, 2048, %s21_s26, [#allocation4], %s2879_s28, %s2879_s28, %s2880_s29  }
  0x1a   :  { %s2881_s7 = smov [#allocation8]  }
  0x1b   :  { %s44_s8 = sshll.u32 %s2881_s7, 4  ;;  %s45_s8 = int_to_ptr.vmem [resolvable:$true] %s44_s8 }
  0x1c   :  { %s2837_s2 = scalar_lea.vmem %s45_s8, 4096  ;;  %p2842_p11 = scmp.lt.s32.totalorder %s45_s8, %s45_s8 }
  0x1d   :  { %p2838_p10 = scmp.ne.s32.totalorder %s45_s8, %s2837_s2  ;;  %p2843_p12 = scmp.lt.s32.totalorder %s2837_s2, %s2837_s2 }
  0x1f   :  { %p2844_p13 = por %p2843_p12, %p2842_p11 }
  0x21   :  { %p2845_p0 = pnand %p2844_p13, %p2838_p10 }
  0x23   :  { %2848 = shalt.err (!%p2845_p0)
}
  0x24   :  { %50 = dma.hbm_to_vmem [thread:$0]  %s3901_s3, 4096, %s45_s8, [#allocation7], %s2876_s21, %s2876_s21, %s2877_s22  }
  0x25   :  { %2869 = dma.done.wait [#allocation4], 2048  }
  0x26   :  { %2870 = vsyncadd [#allocation4], 4294965248 }
  0x27   :  { %2871 = dma.done.wait [#allocation7], 8192  }
  0x28   :  { %2872 = vsyncadd [#allocation7], 4294959104  ;;  %v2882_v0 = vmov 0.0   ;;  %vm2883_vm0 = vmmov 0   ;;  %v2884_v1 = vmov 0   ;;  %v109_v2 = vld [vmem:[#allocation6 + $0xf8] sm:$0xff] }
  0x29   :  { %2161 = vmatprep.subr.mxu1 %v2882_v0  ;;  %186 = vmatprep.mubr.f32.mxu0 %v2882_v0  ;;  %v108_v3 = vld [vmem:[#allocation6 + $0xf0] sm:$0xff]  ;;  %v107_v5 = vld [vmem:[#allocation6 + $0xe8] sm:$0xff]  ;;  %v106_v6 = vld [vmem:[#allocation6 + $0xe0] sm:$0xff] }
  0x2a   :  { %2193 = vmatprep.mubr.msk.f32.mxu1 %vm2883_vm0, %v2882_v0  ;;  %2767 = vset.pattern.permute.xlu0 %v2884_v1  ;;  %v2931_v4 = vld [vmem:[#allocation8 + $0xf0] sm:$0xff]  ;;  %v2934_v7 = vld [vmem:[#allocation8 + $0xe0] sm:$0xff]  ;;  %v105_v8 = vld [vmem:[#allocation6 + $0xd8] sm:$0xff] }
  0x2b   :  { %2768 = vset.pattern.permute.xlu1 %v2884_v1  ;;  %122 = vmatprep.subr.mxu0 %v109_v2  ;;  %v2937_v9 = vld [vmem:[#allocation8 + $0xd0] sm:$0xff]  ;;  %v103_v11 = vld [vmem:[#allocation6 + $0xc8] sm:$0xff]  ;;  %v2941_v12 = vld [vmem:[#allocation8 + $0xc0] sm:$0xff] }
  0x2c   :  { %2162 = vmatpush3.msra.mxu1 %v2931_v4  ;;  %123 = vmatpush1.msra.mxu0 %v108_v3  ;;  %v104_v10 = vld [vmem:[#allocation6 + $0xd0] sm:$0xff]  ;;  %v102_v13 = vld [vmem:[#allocation6 + $0xc0] sm:$0xff]  ;;  %v101_v14 = vld [vmem:[#allocation6 + $0xb8] sm:$0xff] }
  0x2d   :  { %2163 = vmatprep.subr.mxu1 %v2882_v0  ;;  %124 = vmatprep.subr.mxu0 %v107_v5  ;;  %v2945_v15 = vld [vmem:[#allocation8 + $0xb0] sm:$0xff]  ;;  %v99_v17 = vld [vmem:[#allocation6 + $0xa8] sm:$0xff]  ;;  %v2949_v18 = vld [vmem:[#allocation8 + $0xa0] sm:$0xff] }
  0x2e   :  { %2164 = vmatpush3.msra.mxu1 %v2934_v7  ;;  %125 = vmatpush1.msra.mxu0 %v106_v6  ;;  %v100_v16 = vld [vmem:[#allocation6 + $0xb0] sm:$0xff]  ;;  %v98_v19 = vld [vmem:[#allocation6 + $0xa0] sm:$0xff]  ;;  %v97_v20 = vld [vmem:[#allocation6 + $0x98] sm:$0xff] }
  0x2f   :  { %2165 = vmatprep.subr.mxu1 %v2882_v0  ;;  %126 = vmatprep.subr.mxu0 %v105_v8  ;;  %v2953_v21 = vld [vmem:[#allocation8 + $0x90] sm:$0xff]  ;;  %v95_v23 = vld [vmem:[#allocation6 + $0x88] sm:$0xff]  ;;  %v2957_v24 = vld [vmem:[#allocation8 + $0x80] sm:$0xff] }
  0x30   :  { %2166 = vmatpush3.msra.mxu1 %v2937_v9  ;;  %127 = vmatpush1.msra.mxu0 %v104_v10  ;;  %v96_v22 = vld [vmem:[#allocation6 + $0x90] sm:$0xff]  ;;  %v94_v25 = vld [vmem:[#allocation6 + $0x80] sm:$0xff]  ;;  %v93_v26 = vld [vmem:[#allocation6 + $0x78] sm:$0xff] }
  0x31   :  { %2167 = vmatprep.subr.mxu1 %v2882_v0  ;;  %128 = vmatprep.subr.mxu0 %v103_v11  ;;  %v2961_v27 = vld [vmem:[#allocation8 + $0x70] sm:$0xff]  ;;  %v91_v29 = vld [vmem:[#allocation6 + $0x68] sm:$0xff]  ;;  %v2965_v30 = vld [vmem:[#allocation8 + $0x60] sm:$0xff] }
  0x32   :  { %2168 = vmatpush3.msra.mxu1 %v2941_v12  ;;  %129 = vmatpush1.msra.mxu0 %v102_v13  ;;  %v92_v28 = vld [vmem:[#allocation6 + $0x70] sm:$0xff]  ;;  %v90_v31 = vld [vmem:[#allocation6 + $0x60] sm:$0xff]  ;;  %v89_v32 = vld [vmem:[#allocation6 + $0x58] sm:$0xff] }
  0x33   :  { %2169 = vmatprep.subr.mxu1 %v2882_v0  ;;  %130 = vmatprep.subr.mxu0 %v101_v14  ;;  %v2969_v33 = vld [vmem:[#allocation8 + $0x50] sm:$0xff]  ;;  %v87_v35 = vld [vmem:[#allocation6 + $0x48] sm:$0xff]  ;;  %v2973_v36 = vld [vmem:[#allocation8 + $0x40] sm:$0xff] }
  0x34   :  { %2170 = vmatpush3.msra.mxu1 %v2945_v15  ;;  %131 = vmatpush1.msra.mxu0 %v100_v16  ;;  %v88_v34 = vld [vmem:[#allocation6 + $0x50] sm:$0xff]  ;;  %v86_v37 = vld [vmem:[#allocation6 + $0x40] sm:$0xff]  ;;  %v85_v38 = vld [vmem:[#allocation6 + $0x38] sm:$0xff] }
  0x35   :  { %2171 = vmatprep.subr.mxu1 %v2882_v0  ;;  %132 = vmatprep.subr.mxu0 %v99_v17  ;;  %v2977_v39 = vld [vmem:[#allocation8 + $0x30] sm:$0xff]  ;;  %v83_v41 = vld [vmem:[#allocation6 + $0x28] sm:$0xff]  ;;  %v2981_v42 = vld [vmem:[#allocation8 + $0x20] sm:$0xff] }
  0x36   :  { %2172 = vmatpush3.msra.mxu1 %v2949_v18  ;;  %133 = vmatpush1.msra.mxu0 %v98_v19  ;;  %v84_v40 = vld [vmem:[#allocation6 + $0x30] sm:$0xff]  ;;  %v2986_v43 = vld [vmem:[%s3898_s0] sm:$0xff]  ;;  %v81_v45 = vld [vmem:[#allocation6 + $0x18] sm:$0xff] }
  0x37   :  { %2173 = vmatprep.subr.mxu1 %v2882_v0  ;;  %134 = vmatprep.subr.mxu0 %v97_v20  ;;  %v82_v44 = vld [vmem:[#allocation6 + $0x20] sm:$0xff]  ;;  %v2990_v46 = vld [vmem:[#allocation8 + $0x10] sm:$0xff]  ;;  %vm405_vm1 = vcmp.gt.s32.totalorder %v2986_v43, 0  ;;  %v79_v48 = vld [vmem:[#allocation6 + $0x8] sm:$0xff]  ;;  %vm583_vm2 = vcmp.gt.s32.totalorder %v2986_v43, 2  ;;  %vm494_vm3 = vcmp.gt.s32.totalorder %v2986_v43, 1 }
  0x38   :  { %2174 = vmatpush3.msra.mxu1 %v2953_v21  ;;  %135 = vmatpush1.msra.mxu0 %v96_v22  ;;  %v80_v47 = vld [vmem:[#allocation6 + $0x10] sm:$0xff]  ;;  %v2995_v49 = vld [vmem:[#allocation8] sm:$0xff]  ;;  %v414_v52 = vsel %vm405_vm1, 1, %v2884_v1  ;;  %v591_v53 = vsel %vm583_vm2, 1, %v2884_v1  ;;  %vm672_vm4 = vcmp.gt.s32.totalorder %v2986_v43, 3  ;;  %v63_v54 = vld [vmem:[#allocation3 + $0x8] sm:$0xff] }
  0x39   :  { %2175 = vmatprep.subr.mxu1 %v2882_v0  ;;  %136 = vmatprep.subr.mxu0 %v95_v23  ;;  %v78_v50 = vld [vmem:[#allocation6] sm:$0xff]  ;;  %v502_v55 = vsel %vm494_vm3, 1, %v2884_v1  ;;  %vm761_vm5 = vcmp.gt.s32.totalorder %v2986_v43, 4  ;;  %v680_v56 = vsel %vm672_vm4, 1, %v2884_v1  ;;  %vm850_vm6 = vcmp.gt.s32.totalorder %v2986_v43, 5  ;;  %v64_v57 = vld [vmem:[#allocation3 + $0x10] sm:$0xff] }
  0x3a   :  { %2176 = vmatpush3.msra.mxu1 %v2957_v24  ;;  %137 = vmatpush1.msra.mxu0 %v94_v25  ;;  %v62_v51 = vld [vmem:[#allocation3] sm:$0xff]  ;;  %v769_v58 = vsel %vm761_vm5, 1, %v2884_v1  ;;  %vm939_vm7 = vcmp.gt.s32.totalorder %v2986_v43, 6  ;;  %v858_v59 = vsel %vm850_vm6, 1, %v2884_v1  ;;  %vm1028_vm8 = vcmp.gt.s32.totalorder %v2986_v43, 7  ;;  %v65_v60 = vld [vmem:[#allocation3 + $0x18] sm:$0xff] }
  0x3b   :  { %2177 = vmatprep.subr.mxu1 %v2882_v0  ;;  %138 = vmatprep.subr.mxu0 %v93_v26  ;;  %v947_v61 = vsel %vm939_vm7, 1, %v2884_v1  ;;  %vm1117_vm9 = vcmp.gt.s32.totalorder %v2986_v43, 8  ;;  %v1036_v62 = vsel %vm1028_vm8, 1, %v2884_v1  ;;  %vm1206_vm10 = vcmp.gt.s32.totalorder %v2986_v43, 9  ;;  %v66_v63 = vld [vmem:[#allocation3 + $0x20] sm:$0xff]  ;;  %v67_v5 = vld [vmem:[#allocation3 + $0x28] sm:$0xff] }
  0x3c   :  { %2178 = vmatpush3.msra.mxu1 %v2961_v27  ;;  %139 = vmatpush1.msra.mxu0 %v92_v28  ;;  %v1125_v2 = vsel %vm1117_vm9, 1, %v2884_v1  ;;  %vm1295_vm11 = vcmp.gt.s32.totalorder %v2986_v43, 10  ;;  %v1214_v3 = vsel %vm1206_vm10, 1, %v2884_v1  ;;  %vm1384_vm12 = vcmp.gt.s32.totalorder %v2986_v43, 11  ;;  %v68_v10 = vld [vmem:[#allocation3 + $0x30] sm:$0xff]  ;;  %v69_v16 = vld [vmem:[#allocation3 + $0x38] sm:$0xff] }
  0x3d   :  { %2179 = vmatprep.subr.mxu1 %v2882_v0  ;;  %140 = vmatprep.subr.mxu0 %v91_v29  ;;  %v1303_v6 = vsel %vm1295_vm11, 1, %v2884_v1  ;;  %vm1473_vm13 = vcmp.gt.s32.totalorder %v2986_v43, 12  ;;  %v1392_v8 = vsel %vm1384_vm12, 1, %v2884_v1  ;;  %vm1562_vm14 = vcmp.gt.s32.totalorder %v2986_v43, 13  ;;  %v70_v20 = vld [vmem:[#allocation3 + $0x40] sm:$0xff]  ;;  %v71_v25 = vld [vmem:[#allocation3 + $0x48] sm:$0xff] }
  0x3e   :  { %2180 = vmatpush3.msra.mxu1 %v2965_v30  ;;  %141 = vmatpush1.msra.mxu0 %v90_v31  ;;  %v1481_v11 = vsel %vm1473_vm13, 1, %v2884_v1  ;;  %vm1651_vm15 = vcmp.gt.s32.totalorder %v2986_v43, 14  ;;  %v3056_v13 = vadd.s32 4294967295, %v2986_v43  ;;  %v1570_v14 = vsel %vm1562_vm14, 1, %v2884_v1  ;;  %v72_v29 = vld [vmem:[#allocation3 + $0x50] sm:$0xff] }
  0x3f   :  { %2181 = vmatprep.subr.mxu1 %v2882_v0  ;;  %142 = vmatprep.subr.mxu0 %v89_v32  ;;  %vm1740_vm1 = vcmp.gt.s32.totalorder %v2986_v43, 15  ;;  %v1659_v17 = vsel %vm1651_vm15, 1, %v2884_v1  ;;  %v75_v43 = vld [vmem:[#allocation3 + $0x68] sm:$0xff] }
  0x40   :  { %2182 = vmatpush3.msra.mxu1 %v2969_v33  ;;  %143 = vmatpush1.msra.mxu0 %v88_v34  ;;  %vm407_vm2 = vcmp.eq.s32.totalorder %v3056_v13, 0  ;;  %v1748_v19 = vsel %vm1740_vm1, 1, %v2884_v1  ;;  %vm495_vm3 = vcmp.eq.s32.totalorder %v3056_v13, 1  ;;  %vm584_vm4 = vcmp.eq.s32.totalorder %v3056_v13, 2  ;;  %v73_v34 = vld [vmem:[#allocation3 + $0x58] sm:$0xff] }
  0x41   :  { %2183 = vmatprep.subr.mxu1 %v2882_v0  ;;  %144 = vmatprep.subr.mxu0 %v87_v35  ;;  %v408_v22 = vsel %vm407_vm2, 1, %v2884_v1  ;;  %v496_v23 = vsel %vm495_vm3, 1, %v2884_v1  ;;  %vm673_vm5 = vcmp.eq.s32.totalorder %v3056_v13, 3  ;;  %v585_v26 = vsel %vm584_vm4, 1, %v2884_v1 }
  0x42   :  { %2184 = vmatpush3.msra.mxu1 %v2973_v36  ;;  %145 = vmatpush1.msra.mxu0 %v86_v37  ;;  %vm762_vm6 = vcmp.eq.s32.totalorder %v3056_v13, 4  ;;  %v674_v28 = vsel %vm673_vm5, 1, %v2884_v1  ;;  %vm851_vm7 = vcmp.eq.s32.totalorder %v3056_v13, 5  ;;  %vm940_vm8 = vcmp.eq.s32.totalorder %v3056_v13, 6 }
  0x43   :  { %2185 = vmatprep.subr.mxu1 %v2882_v0  ;;  %146 = vmatprep.subr.mxu0 %v85_v38  ;;  %v763_v31 = vsel %vm762_vm6, 1, %v2884_v1  ;;  %v852_v32 = vsel %vm851_vm7, 1, %v2884_v1  ;;  %vm1029_vm9 = vcmp.eq.s32.totalorder %v3056_v13, 7  ;;  %v941_v35 = vsel %vm940_vm8, 1, %v2884_v1  ;;  %v74_v38 = vld [vmem:[#allocation3 + $0x60] sm:$0xff] }
  0x44   :  { %2186 = vmatpush3.msra.mxu1 %v2977_v39  ;;  %147 = vmatpush1.msra.mxu0 %v84_v40  ;;  %vm1118_vm10 = vcmp.eq.s32.totalorder %v3056_v13, 8  ;;  %v1030_v37 = vsel %vm1029_vm9, 1, %v2884_v1  ;;  %vm1207_vm11 = vcmp.eq.s32.totalorder %v3056_v13, 9  ;;  %vm1296_vm12 = vcmp.eq.s32.totalorder %v3056_v13, 10 }
  0x45   :  { %2187 = vmatprep.subr.mxu1 %v2882_v0  ;;  %148 = vmatprep.subr.mxu0 %v83_v41  ;;  %v1119_v40 = vsel %vm1118_vm10, 1, %v2884_v1  ;;  %v1208_v41 = vsel %vm1207_vm11, 1, %v2884_v1  ;;  %vm1385_vm13 = vcmp.eq.s32.totalorder %v3056_v13, 11  ;;  %vm1474_vm14 = vcmp.eq.s32.totalorder %v3056_v13, 12 }
  0x46   :  { %2188 = vmatpush3.msra.mxu1 %v2981_v42  ;;  %149 = vmatpush1.msra.mxu0 %v82_v44  ;;  %v1297_v44 = vsel %vm1296_vm12, 1, %v2884_v1  ;;  %vm1563_vm15 = vcmp.eq.s32.totalorder %v3056_v13, 13  ;;  %vm1652_vm1 = vcmp.eq.s32.totalorder %v3056_v13, 14  ;;  %vm1741_vm2 = vcmp.eq.s32.totalorder %v3056_v13, 15 }
  0x47   :  { %2189 = vmatprep.subr.mxu1 %v2882_v0  ;;  %150 = vmatprep.subr.mxu0 %v81_v45  ;;  %v1386_v45 = vsel %vm1385_vm13, 1, %v2884_v1 }
  0x48   :  { %2190 = vmatpush3.msra.mxu1 %v2990_v46  ;;  %151 = vmatpush1.msra.mxu0 %v80_v47  ;;  %v76_v47 = vld [vmem:[#allocation3 + $0x70] sm:$0xff] }
  0x49   :  { %2191 = vmatprep.subr.mxu1 %v2882_v0  ;;  %152 = vmatprep.subr.mxu0 %v79_v48  ;;  %v1475_v48 = vsel %vm1474_vm14, 1, %v2884_v1 }
  0x4a   :  { %2192 = vmatpush3.msra.mxu1 %v2995_v49  ;;  %153 = vmatpush1.msra.mxu0 %v78_v50  ;;  %v1564_v50 = vsel %vm1563_vm15, 1, %v2884_v1 }
  0x4b   :  { %2194 = vmatmul.mubr.f32.vlgmr.msra.gmra.mxu1 %v2882_v0  ;;  %187 = vmatmul.mubr.f32.vlgmr.msra.gmra.mxu0 %v62_v51  ;;  %v77_v51 = vld [vmem:[#allocation3 + $0x78] sm:$0xff] }
  0x4c   :  { %416 = vperm.xlu0 %2767, %v414_v52   ;;  %192 = vmatprep.mubr.f32.mxu0 %v2882_v0  ;;  %v1653_v52 = vsel %vm1652_vm1, 1, %v2884_v1 }
  0x4d   :  { %593 = vperm.xlu1 %2768, %v591_v53   ;;  %2196 = vmatprep.subr.mxu1 %v2882_v0  ;;  %v112_v53 = vlaneseq }
  0x4e   :  { %2228 = vmatprep.mubr.msk.f32.mxu1 %vm2883_vm0, %v2882_v0  ;;  %2197 = vmatpush3.msra.mxu1 %v2931_v4 }
  0x4f   :  { %2231 = vmatprep.subr.mxu0 %v2882_v0  ;;  %193 = vmatmul.mubr.f32.gmra.mxu0 %v63_v54  ;;  %v1742_v54 = vsel %vm1741_vm2, 1, %v2884_v1  ;;  %v110_v1 = vld [vmem:[%s3902_s4] sm:$0x3]  ;;  %s2885_s4 = smov [#allocation9]  }
  0x50   :  { %504 = vperm.xlu0 %2767, %v502_v55   ;;  %198 = vmatprep.mubr.f32.mxu0 %v2882_v0  ;;  %v113_v55 = vshrl.u32 %v112_v53, 7  ;;  %s1860_s12 = sshll.u32 %s2885_s4, 4  ;;  %s1861_s12 = int_to_ptr.vmem [resolvable:$true] %s1860_s12 }
  0x51   :  { %682 = vperm.xlu1 %2768, %v680_v56   ;;  %2198 = vmatprep.subr.mxu1 %v2882_v0  ;;  %s2849_s13 = scalar_lea.vmem %s1861_s12, 256  ;;  %p2854_p2 = scmp.lt.s32.totalorder %s1861_s12, %s1861_s12 }
  0x52   :  { %2232 = vmatpush3.msra.mxu0 %v2931_v4  ;;  %2199 = vmatpush3.msra.mxu1 %v2934_v7  ;;  %v118_v56 = vsub.s32 1, %v113_v55  ;;  %p2850_p1 = scmp.ne.s32.totalorder %s1861_s12, %s2849_s13  ;;  %p2855_p3 = scmp.lt.s32.totalorder %s2849_s13, %s2849_s13 }
  0x53   :  { %2233 = vmatprep.subr.mxu0 %v2882_v0  ;;  %199 = vmatmul.mubr.f32.gmra.mxu0 %v64_v57 }
  0x54   :  { %771 = vperm.xlu0 %2767, %v769_v58   ;;  %204 = vmatprep.mubr.f32.mxu0 %v2882_v0  ;;  %v3154_v57 = vrot.slane %v110_v1, %v118_v56  ;;  %p2856_p4 = por %p2855_p3, %p2854_p2 }
  0x55   :  { %860 = vperm.xlu1 %2768, %v858_v59   ;;  %2200 = vmatprep.subr.mxu1 %v2882_v0 }
  0x56   :  { %2234 = vmatpush3.msra.mxu0 %v2934_v7  ;;  %2201 = vmatpush3.msra.mxu1 %v2937_v9  ;;  %p2857_p5 = pnand %p2856_p4, %p2850_p1 }
  0x57   :  { %2235 = vmatprep.subr.mxu0 %v2882_v0  ;;  %205 = vmatmul.mubr.f32.gmra.mxu0 %v65_v60 }
  0x58   :  { %949 = vperm.xlu0 %2767, %v947_v61   ;;  %210 = vmatprep.mubr.f32.mxu0 %v2882_v0 }
  0x59   :  { %1038 = vperm.xlu1 %2768, %v1036_v62   ;;  %2202 = vmatprep.subr.mxu1 %v2882_v0 }
  0x5a   :  { %2236 = vmatpush3.msra.mxu0 %v2937_v9  ;;  %2203 = vmatpush3.msra.mxu1 %v2941_v12 }
  0x5b   :  { %2237 = vmatprep.subr.mxu0 %v2882_v0  ;;  %211 = vmatmul.mubr.f32.gmra.mxu0 %v66_v63 }
  0x5c   :  { %1127 = vperm.xlu0 %2767, %v1125_v2   ;;  %216 = vmatprep.mubr.f32.mxu0 %v2882_v0 }
  0x5d   :  { %1216 = vperm.xlu1 %2768, %v1214_v3   ;;  %2204 = vmatprep.subr.mxu1 %v2882_v0 }
  0x5e   :  { %2238 = vmatpush3.msra.mxu0 %v2941_v12  ;;  %2205 = vmatpush3.msra.mxu1 %v2945_v15 }
  0x5f   :  { %2239 = vmatprep.subr.mxu0 %v2882_v0  ;;  %217 = vmatmul.mubr.f32.gmra.mxu0 %v67_v5 }
  0x60   :  { %1305 = vperm.xlu0 %2767, %v1303_v6   ;;  %222 = vmatprep.mubr.f32.mxu0 %v2882_v0 }
  0x61   :  { %1394 = vperm.xlu1 %2768, %v1392_v8   ;;  %2206 = vmatprep.subr.mxu1 %v2882_v0 }
  0x62   :  { %2240 = vmatpush3.msra.mxu0 %v2945_v15  ;;  %2207 = vmatpush3.msra.mxu1 %v2949_v18 }
  0x63   :  { %2241 = vmatprep.subr.mxu0 %v2882_v0  ;;  %223 = vmatmul.mubr.f32.gmra.mxu0 %v68_v10 }
  0x64   :  { %1483 = vperm.xlu0 %2767, %v1481_v11   ;;  %228 = vmatprep.mubr.f32.mxu0 %v2882_v0 }
  0x65   :  { %1572 = vperm.xlu1 %2768, %v1570_v14   ;;  %2208 = vmatprep.subr.mxu1 %v2882_v0  ;;  %v114_v14 = vsub.s32 0, %v113_v55 }
  0x66   :  { %2242 = vmatpush3.msra.mxu0 %v2949_v18  ;;  %2209 = vmatpush3.msra.mxu1 %v2953_v21 }
  0x67   :  { %2243 = vmatprep.subr.mxu0 %v2882_v0  ;;  %229 = vmatmul.mubr.f32.gmra.mxu0 %v69_v16  ;;  %v3183_v16 = vrot.slane %v110_v1, %v114_v14 }
  0x68   :  { %1661 = vperm.xlu0 %2767, %v1659_v17   ;;  %234 = vmatprep.mubr.f32.mxu0 %v2882_v0 }
  0x69   :  { %1750 = vperm.xlu1 %2768, %v1748_v19   ;;  %2210 = vmatprep.subr.mxu1 %v2882_v0 }
  0x6a   :  { %2244 = vmatpush3.msra.mxu0 %v2953_v21  ;;  %2211 = vmatpush3.msra.mxu1 %v2957_v24 }
  0x6b   :  { %2245 = vmatprep.subr.mxu0 %v2882_v0  ;;  %235 = vmatmul.mubr.f32.gmra.mxu0 %v70_v20 }
  0x6c   :  { %410 = vperm.xlu0 %2767, %v408_v22   ;;  %240 = vmatprep.mubr.f32.mxu0 %v2882_v0 }
  0x6d   :  { %498 = vperm.xlu1 %2768, %v496_v23   ;;  %2212 = vmatprep.subr.mxu1 %v2882_v0 }
  0x6e   :  { %2246 = vmatpush3.msra.mxu0 %v2957_v24  ;;  %2213 = vmatpush3.msra.mxu1 %v2961_v27 }
  0x6f   :  { %2247 = vmatprep.subr.mxu0 %v2882_v0  ;;  %241 = vmatmul.mubr.f32.gmra.mxu0 %v71_v25 }
  0x70   :  { %587 = vperm.xlu0 %2767, %v585_v26   ;;  %246 = vmatprep.mubr.f32.mxu0 %v2882_v0 }
  0x71   :  { %676 = vperm.xlu1 %2768, %v674_v28   ;;  %2214 = vmatprep.subr.mxu1 %v2882_v0 }
  0x72   :  { %2248 = vmatpush3.msra.mxu0 %v2961_v27  ;;  %2215 = vmatpush3.msra.mxu1 %v2965_v30 }
  0x73   :  { %2249 = vmatprep.subr.mxu0 %v2882_v0  ;;  %247 = vmatmul.mubr.f32.gmra.mxu0 %v72_v29 }
  0x74   :  { %765 = vperm.xlu0 %2767, %v763_v31   ;;  %252 = vmatprep.mubr.f32.mxu0 %v2882_v0 }
  0x75   :  { %854 = vperm.xlu1 %2768, %v852_v32   ;;  %2216 = vmatprep.subr.mxu1 %v2882_v0 }
  0x76   :  { %2250 = vmatpush3.msra.mxu0 %v2965_v30  ;;  %2217 = vmatpush3.msra.mxu1 %v2969_v33 }
  0x77   :  { %2251 = vmatprep.subr.mxu0 %v2882_v0  ;;  %253 = vmatmul.mubr.f32.gmra.mxu0 %v73_v34 }
  0x78   :  { %943 = vperm.xlu0 %2767, %v941_v35   ;;  %258 = vmatprep.mubr.f32.mxu0 %v2882_v0 }
  0x79   :  { %1032 = vperm.xlu1 %2768, %v1030_v37   ;;  %2218 = vmatprep.subr.mxu1 %v2882_v0 }
  0x7a   :  { %2252 = vmatpush3.msra.mxu0 %v2969_v33  ;;  %2219 = vmatpush3.msra.mxu1 %v2973_v36 }
  0x7b   :  { %2253 = vmatprep.subr.mxu0 %v2882_v0  ;;  %259 = vmatmul.mubr.f32.gmra.mxu0 %v74_v38 }
  0x7c   :  { %1121 = vperm.xlu0 %2767, %v1119_v40   ;;  %264 = vmatprep.mubr.f32.mxu0 %v2882_v0 }
  0x7d   :  { %1210 = vperm.xlu1 %2768, %v1208_v41   ;;  %2220 = vmatprep.subr.mxu1 %v2882_v0 }
  0x7e   :  { %2254 = vmatpush3.msra.mxu0 %v2973_v36  ;;  %2221 = vmatpush3.msra.mxu1 %v2977_v39 }
  0x7f   :  { %2255 = vmatprep.subr.mxu0 %v2882_v0  ;;  %265 = vmatmul.mubr.f32.gmra.mxu0 %v75_v43 }
  0x80   :  { %1299 = vperm.xlu0 %2767, %v1297_v44   ;;  %270 = vmatprep.mubr.f32.mxu0 %v2882_v0 }
  0x81   :  { %1388 = vperm.xlu1 %2768, %v1386_v45   ;;  %2222 = vmatprep.subr.mxu1 %v2882_v0 }
  0x82   :  { %2256 = vmatpush3.msra.mxu0 %v2977_v39  ;;  %2223 = vmatpush3.msra.mxu1 %v2981_v42 }
  0x83   :  { %2257 = vmatprep.subr.mxu0 %v2882_v0  ;;  %271 = vmatmul.mubr.f32.gmra.mxu0 %v76_v47 }
  0x84   :  { %1477 = vperm.xlu0 %2767, %v1475_v48   ;;  %276 = vmatprep.mubr.f32.mxu0 %v2882_v0 }
  0x85   :  { %1566 = vperm.xlu1 %2768, %v1564_v50   ;;  %2224 = vmatprep.subr.mxu1 %v2882_v0 }
  0x86   :  { %2258 = vmatpush3.msra.mxu0 %v2981_v42  ;;  %2225 = vmatpush3.msra.mxu1 %v2990_v46 }
  0x87   :  { %2259 = vmatprep.subr.mxu0 %v2882_v0  ;;  %277 = vmatmul.mubr.f32.gmra.mxu0 %v77_v51 }
  0x88   :  { %1655 = vperm.xlu0 %2767, %v1653_v52   ;;  %2226 = vmatprep.subr.mxu1 %v2882_v0 }
  0x89   :  { %1744 = vperm.xlu1 %2768, %v1742_v54   ;;  %2227 = vmatpush3.msra.mxu1 %v2995_v49 }
  0x8a   :  { %2260 = vmatpush3.msra.mxu0 %v2990_v46  ;;  %2263 = vmatprep.mubr.msk.f32.mxu0 %vm2883_vm0, %v2882_v0 }
  0x8b   :  { %2261 = vmatprep.subr.mxu0 %v2882_v0  ;;  %2266 = vmatprep.subr.mxu1 %v2882_v0 }
  0x8c   :  { %2262 = vmatpush3.msra.mxu0 %v2995_v49 }
  0x8d   :  { %2301 = vmatprep.subr.mxu0 %v2882_v0 }
  0xc7   :  { %v417_v59 = vpop.permute.xlu0 %416 }
  0xc8   :  { %v3157_v58 = vpop.permute.xlu1 %593  ;;  %vm418_vm3 = vcmp.eq.s32.totalorder %v417_v59, 1 }
  0xcb   :  { %v3161_v61 = vpop.permute.xlu0 %504 }
  0xcc   :  { %v3159_v60 = vpop.permute.xlu1 %682 }
  0xcf   :  { %v3165_v63 = vpop.permute.xlu0 %771 }
  0xd0   :  { %v3163_v62 = vpop.permute.xlu1 %860 }
  0xd3   :  { %v3169_v3 = vpop.permute.xlu0 %949 }
  0xd4   :  { %v3167_v2 = vpop.permute.xlu1 %1038 }
  0xd7   :  { %v3173_v6 = vpop.permute.xlu0 %1127 }
  0xd8   :  { %v3171_v5 = vpop.permute.xlu1 %1216 }
  0xdb   :  { %v3177_v10 = vpop.permute.xlu0 %1305 }
  0xdc   :  { %v3175_v8 = vpop.permute.xlu1 %1394 }
  0xdf   :  { %v3181_v13 = vpop.permute.xlu0 %1483 }
  0xe0   :  { %v3179_v11 = vpop.permute.xlu1 %1572 }
  0xe3   :  { %v3187_v19 = vpop.permute.xlu0 %1661 }
  0xe4   :  { %v3185_v17 = vpop.permute.xlu1 %1750 }
  0xe7   :  { %v411_v32 = vpop.permute.xlu0 %410 }
  0xe8   :  { %v499_v31 = vpop.permute.xlu1 %498  ;;  %vm412_vm4 = vcmp.eq.s32.totalorder %v411_v32, 1 }
  0xe9   :  { %vm500_vm5 = vcmp.eq.s32.totalorder %v499_v31, 1 }
  0xeb   :  { %v588_v45 = vpop.permute.xlu0 %587 }
  0xec   :  { %v677_v48 = vpop.permute.xlu1 %676  ;;  %vm589_vm6 = vcmp.eq.s32.totalorder %v588_v45, 1 }
  0xed   :  { %vm678_vm7 = vcmp.eq.s32.totalorder %v677_v48, 1 }
  0xef   :  { %v766_v14 = vpop.permute.xlu0 %765 }
  0xf0   :  { %vm767_vm8 = vcmp.eq.s32.totalorder %v766_v14, 1 }
 0x10b   :  { %v400_v20 = vpop.f32.mrf.mxu1  ;;  %v188_v22 = vpop.f32.mrf.mxu0 }
 0x10c   :  { %v189_v23 = vadd.f32 %v188_v22, %v3183_v16  ;;  %v855_v22 = vpop.permute.xlu1 %854 }
 0x10d   :  { %v2195_v25 = vpop.f32.mrf.mxu1  ;;  %v190_v26 = vpop.f32.mrf.mxu0  ;;  %vm856_vm9 = vcmp.eq.s32.totalorder %v855_v22, 1 }
 0x10e   :  { %v404_v28 = vadd.f32 %v400_v20, %v189_v23  ;;  %v191_v29 = vadd.f32 %v190_v26, %v3154_v57 }
 0x10f   :  { %v3191_v34 = vpop.f32.mrf.mxu0 }
 0x110   :  { %v3193_v35 = vsel %vm418_vm3, %v404_v28, 0.0  ;;  %2229 = vmatmul.mubr.msk.f32.vlgmr.msra.gmra.mxu1 %vm418_vm3, %v404_v28  ;;  %v413_v40 = vsel %vm412_vm4, %v191_v29, -1e+09 }
 0x111   :  { %v196_v37 = vpop.f32.mrf.mxu0  ;;  %2267 = vmatpush3.msra.mxu1 %v2931_v4  ;;  %2298 = vmatprep.mubr.msk.f32.mxu1 %vm2883_vm0, %v2882_v0 }
 0x112   :  { %v197_v38 = vadd.f32 %v196_v37, %v3154_v57  ;;  %2268 = vmatprep.subr.mxu1 %v2882_v0 }
 0x113   :  { %v3200_v41 = vpop.f32.mrf.mxu0  ;;  %2269 = vmatpush3.msra.mxu1 %v2934_v7 }
 0x114   :  { %v501_v43 = vsel %vm500_vm5, %v197_v38, %v413_v40  ;;  %2270 = vmatprep.subr.mxu1 %v2882_v0  ;;  %v944_v40 = vpop.permute.xlu0 %943  ;;  %vm506_vm5 = vcmp.eq.s32.totalorder %v3161_v61, 1 }
 0x115   :  { %v202_v44 = vpop.f32.mrf.mxu0  ;;  %2271 = vmatpush3.msra.mxu1 %v2937_v9  ;;  %vm945_vm10 = vcmp.eq.s32.totalorder %v944_v40, 1 }
 0x116   :  { %v203_v47 = vadd.f32 %v202_v44, %v3154_v57  ;;  %2272 = vmatprep.subr.mxu1 %v2882_v0  ;;  %v1033_v44 = vpop.permute.xlu1 %1032 }
 0x117   :  { %v206_v50 = vpop.f32.mrf.mxu0  ;;  %2273 = vmatpush3.msra.mxu1 %v2941_v12  ;;  %vm1034_vm11 = vcmp.eq.s32.totalorder %v1033_v44, 1 }
 0x118   :  { %v3209_v51 = vadd.f32 %v206_v50, %v3183_v16  ;;  %v590_v52 = vsel %vm589_vm6, %v203_v47, %v501_v43  ;;  %2274 = vmatprep.subr.mxu1 %v2882_v0  ;;  %vm595_vm6 = vcmp.eq.s32.totalorder %v3157_v58, 1 }
 0x119   :  { %v208_v53 = vpop.f32.mrf.mxu0  ;;  %2275 = vmatpush3.msra.mxu1 %v2945_v15 }
 0x11a   :  { %v209_v54 = vadd.f32 %v208_v53, %v3154_v57  ;;  %2276 = vmatprep.subr.mxu1 %v2882_v0 }
 0x11b   :  { %v212_v55 = vpop.f32.mrf.mxu0  ;;  %2277 = vmatpush3.msra.mxu1 %v2949_v18 }
 0x11c   :  { %v679_v56 = vsel %vm678_vm7, %v209_v54, %v590_v52  ;;  %v3217_v1 = vadd.f32 %v212_v55, %v3183_v16  ;;  %2278 = vmatprep.subr.mxu1 %v2882_v0  ;;  %vm684_vm7 = vcmp.eq.s32.totalorder %v3159_v60, 1 }
 0x11d   :  { %v214_v59 = vpop.f32.mrf.mxu0  ;;  %2279 = vmatpush3.msra.mxu1 %v2953_v21 }
 0x11e   :  { %v215_v20 = vadd.f32 %v214_v59, %v3154_v57  ;;  %2280 = vmatprep.subr.mxu1 %v2882_v0  ;;  %v1122_v59 = vpop.permute.xlu0 %1121 }
 0x11f   :  { %v218_v23 = vpop.f32.mrf.mxu0  ;;  %2281 = vmatpush3.msra.mxu1 %v2957_v24  ;;  %vm1123_vm12 = vcmp.eq.s32.totalorder %v1122_v59, 1 }
 0x120   :  { %v3225_v25 = vadd.f32 %v218_v23, %v3183_v16  ;;  %v768_v26 = vsel %vm767_vm8, %v215_v20, %v679_v56  ;;  %2282 = vmatprep.subr.mxu1 %v2882_v0  ;;  %v1211_v20 = vpop.permute.xlu1 %1210  ;;  %vm773_vm8 = vcmp.eq.s32.totalorder %v3165_v63, 1 }
 0x121   :  { %v220_v28 = vpop.f32.mrf.mxu0  ;;  %2283 = vmatpush3.msra.mxu1 %v2961_v27  ;;  %vm1212_vm13 = vcmp.eq.s32.totalorder %v1211_v20, 1 }
 0x122   :  { %v221_v29 = vadd.f32 %v220_v28, %v3154_v57  ;;  %2284 = vmatprep.subr.mxu1 %v2882_v0 }
 0x123   :  { %v224_v31 = vpop.f32.mrf.mxu0  ;;  %2285 = vmatpush3.msra.mxu1 %v2965_v30 }
 0x124   :  { %v857_v32 = vsel %vm856_vm9, %v221_v29, %v768_v26  ;;  %v3233_v37 = vadd.f32 %v224_v31, %v3183_v16  ;;  %2286 = vmatprep.subr.mxu1 %v2882_v0  ;;  %vm862_vm9 = vcmp.eq.s32.totalorder %v3163_v62, 1 }
 0x125   :  { %v226_v38 = vpop.f32.mrf.mxu0  ;;  %2287 = vmatpush3.msra.mxu1 %v2969_v33 }
 0x126   :  { %v227_v43 = vadd.f32 %v226_v38, %v3154_v57  ;;  %2288 = vmatprep.subr.mxu1 %v2882_v0 }
 0x127   :  { %v230_v45 = vpop.f32.mrf.mxu0  ;;  %2289 = vmatpush3.msra.mxu1 %v2973_v36 }
 0x128   :  { %v3241_v47 = vadd.f32 %v230_v45, %v3183_v16  ;;  %v946_v48 = vsel %vm945_vm10, %v227_v43, %v857_v32  ;;  %2290 = vmatprep.subr.mxu1 %v2882_v0  ;;  %v1300_v43 = vpop.permute.xlu0 %1299  ;;  %v1389_v45 = vpop.permute.xlu1 %1388  ;;  %vm951_vm10 = vcmp.eq.s32.totalorder %v3169_v3, 1 }
 0x129   :  { %v232_v50 = vpop.f32.mrf.mxu0  ;;  %2291 = vmatpush3.msra.mxu1 %v2977_v39  ;;  %vm1301_vm14 = vcmp.eq.s32.totalorder %v1300_v43, 1  ;;  %vm1390_vm15 = vcmp.eq.s32.totalorder %v1389_v45, 1 }
 0x12a   :  { %v233_v52 = vadd.f32 %v232_v50, %v3154_v57  ;;  %2292 = vmatprep.subr.mxu1 %v2882_v0 }
 0x12b   :  { %v236_v53 = vpop.f32.mrf.mxu0  ;;  %2293 = vmatpush3.msra.mxu1 %v2981_v42 }
 0x12c   :  { %v1035_v54 = vsel %vm1034_vm11, %v233_v52, %v946_v48  ;;  %v3249_v55 = vadd.f32 %v236_v53, %v3183_v16  ;;  %2294 = vmatprep.subr.mxu1 %v2882_v0  ;;  %vm1040_vm11 = vcmp.eq.s32.totalorder %v3167_v2, 1 }
 0x12d   :  { %v238_v56 = vpop.f32.mrf.mxu0  ;;  %2295 = vmatpush3.msra.mxu1 %v2990_v46 }
 0x12e   :  { %v239_v14 = vadd.f32 %v238_v56, %v3154_v57  ;;  %2296 = vmatprep.subr.mxu1 %v2882_v0 }
 0x12f   :  { %v242_v22 = vpop.f32.mrf.mxu0  ;;  %2297 = vmatpush3.msra.mxu1 %v2995_v49 }
 0x130   :  { %v3257_v23 = vadd.f32 %v242_v22, %v3183_v16  ;;  %v1124_v26 = vsel %vm1123_vm12, %v239_v14, %v1035_v54  ;;  %2336 = vmatprep.subr.mxu1 %v2882_v0  ;;  %v1478_v22 = vpop.permute.xlu0 %1477  ;;  %vm1129_vm12 = vcmp.eq.s32.totalorder %v3173_v6, 1 }
 0x131   :  { %v244_v28 = vpop.f32.mrf.mxu0  ;;  %vm1479_vm1 = vcmp.eq.s32.totalorder %v1478_v22, 1 }
 0x132   :  { %v245_v29 = vadd.f32 %v244_v28, %v3154_v57  ;;  %v1567_v28 = vpop.permute.xlu1 %1566 }
 0x133   :  { %v248_v31 = vpop.f32.mrf.mxu0  ;;  %vm1568_vm2 = vcmp.eq.s32.totalorder %v1567_v28, 1 }
 0x134   :  { %v1213_v32 = vsel %vm1212_vm13, %v245_v29, %v1124_v26  ;;  %v3262_v38 = vadd.f32 %v248_v31, %v3183_v16  ;;  %v1656_v45 = vpop.permute.xlu0 %1655  ;;  %vm1218_vm13 = vcmp.eq.s32.totalorder %v3171_v5, 1 }
 0x135   :  { %v250_v40 = vpop.f32.mrf.mxu0  ;;  %vm1657_vm3 = vcmp.eq.s32.totalorder %v1656_v45, 1 }
 0x136   :  { %v251_v44 = vadd.f32 %v250_v40, %v3154_v57 }
 0x137   :  { %v254_v48 = vpop.f32.mrf.mxu0 }
 0x138   :  { %v3266_v50 = vadd.f32 %v254_v48, %v3183_v16  ;;  %v1302_v52 = vsel %vm1301_vm14, %v251_v44, %v1213_v32  ;;  %vm1307_vm14 = vcmp.eq.s32.totalorder %v3177_v10, 1 }
 0x139   :  { %v256_v53 = vpop.f32.mrf.mxu0 }
 0x13a   :  { %v257_v54 = vadd.f32 %v256_v53, %v3154_v57 }
 0x13b   :  { %v260_v56 = vpop.f32.mrf.mxu0 }
 0x13c   :  { %v1391_v59 = vsel %vm1390_vm15, %v257_v54, %v1302_v52  ;;  %v3270_v14 = vadd.f32 %v260_v56, %v3183_v16  ;;  %v1745_v56 = vpop.permute.xlu1 %1744  ;;  %vm1396_vm15 = vcmp.eq.s32.totalorder %v3175_v8, 1 }
 0x13d   :  { %v262_v20 = vpop.f32.mrf.mxu0  ;;  %vm1746_vm4 = vcmp.eq.s32.totalorder %v1745_v56, 1  ;;  %v3439_v56 = vld [vmem:[#allocation8 + $0x10] sm:$0xff] }
 0x13e   :  { %v263_v26 = vadd.f32 %v262_v20, %v3154_v57 }
 0x13f   :  { %v266_v29 = vpop.f32.mrf.mxu0 }
 0x140   :  { %v3274_v31 = vadd.f32 %v266_v29, %v3183_v16  ;;  %v1480_v32 = vsel %vm1479_vm1, %v263_v26, %v1391_v59  ;;  %vm1485_vm1 = vcmp.eq.s32.totalorder %v3181_v13, 1 }
 0x141   :  { %v268_v40 = vpop.f32.mrf.mxu0 }
 0x142   :  { %v269_v43 = vadd.f32 %v268_v40, %v3154_v57 }
 0x143   :  { %v272_v44 = vpop.f32.mrf.mxu0 }
 0x144   :  { %v1569_v48 = vsel %vm1568_vm2, %v269_v43, %v1480_v32  ;;  %v3278_v52 = vadd.f32 %v272_v44, %v3183_v16  ;;  %v195_v32 = vadd.f32 %v3191_v34, %v3183_v16  ;;  %v3361_v34 = vld [vmem:[#allocation8 + $0xa0] sm:$0xff]  ;;  %vm1574_vm2 = vcmp.eq.s32.totalorder %v3179_v11, 1 }
 0x145   :  { %v274_v53 = vpop.f32.mrf.mxu0 }
 0x146   :  { %v275_v54 = vadd.f32 %v274_v53, %v3154_v57  ;;  %v3431_v53 = vld [vmem:[#allocation8 + $0x30] sm:$0xff] }
 0x147   :  { %v278_v20 = vpop.f32.mrf.mxu0 }
 0x148   :  { %v3282_v22 = vadd.f32 %v278_v20, %v3183_v16  ;;  %v1658_v59 = vsel %vm1657_vm3, %v275_v54, %v1569_v48  ;;  %v3369_v48 = vld [vmem:[#allocation8 + $0x80] sm:$0xff]  ;;  %vm1752_vm3 = vcmp.eq.s32.totalorder %v3185_v17, 1 }
 0x149   :  { %v280_v26 = vpop.f32.mrf.mxu0  ;;  %v3435_v54 = vld [vmem:[#allocation8 + $0x20] sm:$0xff] }
 0x14a   :  { %v281_v28 = vadd.f32 %v280_v26, %v3154_v57  ;;  %v3353_v57 = vld [vmem:[#allocation8 + $0xc0] sm:$0xff] }
 0x14c   :  { %v3285_v29 = vsel %vm1746_vm4, %v281_v28, %v1658_v59 }
 0x1d0   :  { %v489_v40 = vpop.f32.mrf.mxu1 }
 0x1d1   :  { %v493_v43 = vadd.f32 %v489_v40, %v195_v32 }
 0x1d2   :  { %v2230_v44 = vpop.f32.mrf.mxu1 }
 0x1d3   :  { %v3293_v45 = vsel %vm506_vm5, %v493_v43, %v3193_v35 }
 0x1d4   :  { %2264 = vmatmul.mubr.f32.vlgmr.msra.gmra.mxu0 %v3293_v45 }
 0x1d5   :  { %2302 = vmatpush3.msra.mxu0 %v2931_v4  ;;  %2333 = vmatprep.mubr.msk.f32.mxu0 %vm2883_vm0, %v2882_v0  ;;  %v201_v4 = vadd.f32 %v3200_v41, %v3183_v16  ;;  %v3357_v16 = vld [vmem:[#allocation8 + $0xb0] sm:$0xff] }
 0x1d6   :  { %2303 = vmatprep.subr.mxu0 %v2882_v0  ;;  %v3365_v41 = vld [vmem:[#allocation8 + $0x90] sm:$0xff] }
 0x1d7   :  { %2304 = vmatpush3.msra.mxu0 %v2934_v7 }
 0x1d8   :  { %2305 = vmatprep.subr.mxu0 %v2882_v0 }
 0x1d9   :  { %2306 = vmatpush3.msra.mxu0 %v2937_v9 }
 0x1da   :  { %2307 = vmatprep.subr.mxu0 %v2882_v0 }
 0x1db   :  { %2308 = vmatpush3.msra.mxu0 %v2941_v12 }
 0x1dc   :  { %2309 = vmatprep.subr.mxu0 %v2882_v0 }
 0x1dd   :  { %2310 = vmatpush3.msra.mxu0 %v2945_v15 }
 0x1de   :  { %2311 = vmatprep.subr.mxu0 %v2882_v0 }
 0x1df   :  { %2312 = vmatpush3.msra.mxu0 %v2949_v18  ;;  %v3339_v18 = vld [vmem:[#allocation8 + $0xf0] sm:$0xff] }
 0x1e0   :  { %2313 = vmatprep.subr.mxu0 %v2882_v0 }
 0x1e1   :  { %2314 = vmatpush3.msra.mxu0 %v2953_v21  ;;  %v3345_v21 = vld [vmem:[#allocation8 + $0xe0] sm:$0xff] }
 0x1e2   :  { %2315 = vmatprep.subr.mxu0 %v2882_v0 }
 0x1e3   :  { %2316 = vmatpush3.msra.mxu0 %v2957_v24  ;;  %v3349_v24 = vld [vmem:[#allocation8 + $0xd0] sm:$0xff] }
 0x1e4   :  { %2317 = vmatprep.subr.mxu0 %v2882_v0 }
 0x1e5   :  { %2318 = vmatpush3.msra.mxu0 %v2961_v27 }
 0x1e6   :  { %2319 = vmatprep.subr.mxu0 %v2882_v0 }
 0x1e7   :  { %2320 = vmatpush3.msra.mxu0 %v2965_v30 }
 0x1e8   :  { %2321 = vmatprep.subr.mxu0 %v2882_v0 }
 0x1e9   :  { %2322 = vmatpush3.msra.mxu0 %v2969_v33 }
 0x1ea   :  { %2323 = vmatprep.subr.mxu0 %v2882_v0 }
 0x1eb   :  { %2324 = vmatpush3.msra.mxu0 %v2973_v36 }
 0x1ec   :  { %2325 = vmatprep.subr.mxu0 %v2882_v0 }
 0x1ed   :  { %2326 = vmatpush3.msra.mxu0 %v2977_v39 }
 0x1ee   :  { %2327 = vmatprep.subr.mxu0 %v2882_v0 }
 0x1ef   :  { %2328 = vmatpush3.msra.mxu0 %v2981_v42 }
 0x1f0   :  { %2329 = vmatprep.subr.mxu0 %v2882_v0 }
 0x1f1   :  { %2330 = vmatpush3.msra.mxu0 %v2990_v46 }
 0x1f2   :  { %2331 = vmatprep.subr.mxu0 %v2882_v0 }
 0x1f3   :  { %2332 = vmatpush3.msra.mxu0 %v2995_v49 }
 0x1f4   :  { %2371 = vmatprep.subr.mxu0 %v2882_v0 }
 0x294   :  { %v578_v7 = vpop.f32.mrf.mxu0 }
 0x295   :  { %v582_v9 = vadd.f32 %v578_v7, %v201_v4 }
 0x296   :  { %v2265_v12 = vpop.f32.mrf.mxu0 }
 0x297   :  { %v3336_v15 = vsel %vm595_vm6, %v582_v9, %v3293_v45 }
 0x298   :  { %2299 = vmatmul.mubr.f32.vlgmr.msra.gmra.mxu1 %v3336_v15 }
 0x299   :  { %2337 = vmatpush3.msra.mxu1 %v3339_v18  ;;  %2368 = vmatprep.mubr.msk.f32.mxu1 %vm2883_vm0, %v2882_v0 }
 0x29a   :  { %2338 = vmatprep.subr.mxu1 %v2882_v0 }
 0x29b   :  { %2339 = vmatpush3.msra.mxu1 %v3345_v21 }
 0x29c   :  { %2340 = vmatprep.subr.mxu1 %v2882_v0 }
 0x29d   :  { %2341 = vmatpush3.msra.mxu1 %v3349_v24 }
 0x29e   :  { %2342 = vmatprep.subr.mxu1 %v2882_v0 }
 0x29f   :  { %2343 = vmatpush3.msra.mxu1 %v3353_v57 }
 0x2a0   :  { %2344 = vmatprep.subr.mxu1 %v2882_v0 }
 0x2a1   :  { %2345 = vmatpush3.msra.mxu1 %v3357_v16 }
 0x2a2   :  { %2346 = vmatprep.subr.mxu1 %v2882_v0 }
 0x2a3   :  { %2347 = vmatpush3.msra.mxu1 %v3361_v34 }
 0x2a4   :  { %2348 = vmatprep.subr.mxu1 %v2882_v0 }
 0x2a5   :  { %2349 = vmatpush3.msra.mxu1 %v3365_v41 }
 0x2a6   :  { %2350 = vmatprep.subr.mxu1 %v2882_v0 }
 0x2a7   :  { %2351 = vmatpush3.msra.mxu1 %v3369_v48 }
 0x2a8   :  { %2352 = vmatprep.subr.mxu1 %v2882_v0 }
 0x2a9   :  { %2353 = vmatpush3.msra.mxu1 %v2961_v27 }
 0x2aa   :  { %2354 = vmatprep.subr.mxu1 %v2882_v0 }
 0x2ab   :  { %2355 = vmatpush3.msra.mxu1 %v2965_v30 }
 0x2ac   :  { %2356 = vmatprep.subr.mxu1 %v2882_v0 }
 0x2ad   :  { %2357 = vmatpush3.msra.mxu1 %v2969_v33 }
 0x2ae   :  { %2358 = vmatprep.subr.mxu1 %v2882_v0 }
 0x2af   :  { %2359 = vmatpush3.msra.mxu1 %v2973_v36 }
 0x2b0   :  { %2360 = vmatprep.subr.mxu1 %v2882_v0 }
 0x2b1   :  { %2361 = vmatpush3.msra.mxu1 %v2977_v39  ;;  %v3415_v39 = vld [vmem:[#allocation8 + $0x70] sm:$0xff] }
 0x2b2   :  { %2362 = vmatprep.subr.mxu1 %v2882_v0 }
 0x2b3   :  { %2363 = vmatpush3.msra.mxu1 %v2981_v42  ;;  %v3419_v42 = vld [vmem:[#allocation8 + $0x60] sm:$0xff] }
 0x2b4   :  { %2364 = vmatprep.subr.mxu1 %v2882_v0 }
 0x2b5   :  { %2365 = vmatpush3.msra.mxu1 %v2990_v46  ;;  %v3423_v46 = vld [vmem:[#allocation8 + $0x50] sm:$0xff] }
 0x2b6   :  { %2366 = vmatprep.subr.mxu1 %v2882_v0 }
 0x2b7   :  { %2367 = vmatpush3.msra.mxu1 %v2995_v49 }
 0x2b8   :  { %2406 = vmatprep.subr.mxu1 %v2882_v0 }
 0x358   :  { %v667_v27 = vpop.f32.mrf.mxu1 }
 0x359   :  { %v671_v30 = vadd.f32 %v667_v27, %v3209_v51  ;;  %v3427_v51 = vld [vmem:[#allocation8 + $0x40] sm:$0xff] }
 0x35a   :  { %v2300_v33 = vpop.f32.mrf.mxu1 }
 0x35b   :  { %v3394_v36 = vsel %vm684_vm7, %v671_v30, %v3336_v15 }
 0x35c   :  { %2334 = vmatmul.mubr.f32.vlgmr.msra.gmra.mxu0 %v3394_v36 }
 0x35d   :  { %2372 = vmatpush3.msra.mxu0 %v3339_v18  ;;  %2403 = vmatprep.mubr.msk.f32.mxu0 %vm2883_vm0, %v2882_v0 }
 0x35e   :  { %2373 = vmatprep.subr.mxu0 %v2882_v0 }
 0x35f   :  { %2374 = vmatpush3.msra.mxu0 %v3345_v21 }
 0x360   :  { %2375 = vmatprep.subr.mxu0 %v2882_v0 }
 0x361   :  { %2376 = vmatpush3.msra.mxu0 %v3349_v24 }
 0x362   :  { %2377 = vmatprep.subr.mxu0 %v2882_v0 }
 0x363   :  { %2378 = vmatpush3.msra.mxu0 %v3353_v57 }
 0x364   :  { %2379 = vmatprep.subr.mxu0 %v2882_v0 }
 0x365   :  { %2380 = vmatpush3.msra.mxu0 %v3357_v16 }
 0x366   :  { %2381 = vmatprep.subr.mxu0 %v2882_v0 }
 0x367   :  { %2382 = vmatpush3.msra.mxu0 %v3361_v34 }
 0x368   :  { %2383 = vmatprep.subr.mxu0 %v2882_v0 }
 0x369   :  { %2384 = vmatpush3.msra.mxu0 %v3365_v41 }
 0x36a   :  { %2385 = vmatprep.subr.mxu0 %v2882_v0 }
 0x36b   :  { %2386 = vmatpush3.msra.mxu0 %v3369_v48 }
 0x36c   :  { %2387 = vmatprep.subr.mxu0 %v2882_v0 }
 0x36d   :  { %2388 = vmatpush3.msra.mxu0 %v3415_v39 }
 0x36e   :  { %2389 = vmatprep.subr.mxu0 %v2882_v0 }
 0x36f   :  { %2390 = vmatpush3.msra.mxu0 %v3419_v42 }
 0x370   :  { %2391 = vmatprep.subr.mxu0 %v2882_v0 }
 0x371   :  { %2392 = vmatpush3.msra.mxu0 %v3423_v46 }
 0x372   :  { %2393 = vmatprep.subr.mxu0 %v2882_v0 }
 0x373   :  { %2394 = vmatpush3.msra.mxu0 %v3427_v51 }
 0x374   :  { %2395 = vmatprep.subr.mxu0 %v2882_v0 }
 0x375   :  { %2396 = vmatpush3.msra.mxu0 %v3431_v53 }
 0x376   :  { %2397 = vmatprep.subr.mxu0 %v2882_v0 }
 0x377   :  { %2398 = vmatpush3.msra.mxu0 %v3435_v54 }
 0x378   :  { %2399 = vmatprep.subr.mxu0 %v2882_v0 }
 0x379   :  { %2400 = vmatpush3.msra.mxu0 %v3439_v56 }
 0x37a   :  { %2401 = vmatprep.subr.mxu0 %v2882_v0 }
 0x37b   :  { %2402 = vmatpush3.msra.mxu0 %v2995_v49  ;;  %v3485_v49 = vld [vmem:[#allocation8] sm:$0xff] }
 0x37c   :  { %2441 = vmatprep.subr.mxu0 %v2882_v0 }
 0x41c   :  { %v756_v20 = vpop.f32.mrf.mxu0 }
 0x41d   :  { %v760_v59 = vadd.f32 %v756_v20, %v3217_v1 }
 0x41e   :  { %v2335_v26 = vpop.f32.mrf.mxu0 }
 0x41f   :  { %v3450_v28 = vsel %vm773_vm8, %v760_v59, %v3394_v36 }
 0x420   :  { %2369 = vmatmul.mubr.f32.vlgmr.msra.gmra.mxu1 %v3450_v28 }
 0x421   :  { %2407 = vmatpush3.msra.mxu1 %v3339_v18  ;;  %2438 = vmatprep.mubr.msk.f32.mxu1 %vm2883_vm0, %v2882_v0 }
 0x422   :  { %2408 = vmatprep.subr.mxu1 %v2882_v0 }
 0x423   :  { %2409 = vmatpush3.msra.mxu1 %v3345_v21 }
 0x424   :  { %2410 = vmatprep.subr.mxu1 %v2882_v0 }
 0x425   :  { %2411 = vmatpush3.msra.mxu1 %v3349_v24 }
 0x426   :  { %2412 = vmatprep.subr.mxu1 %v2882_v0 }
 0x427   :  { %2413 = vmatpush3.msra.mxu1 %v3353_v57 }
 0x428   :  { %2414 = vmatprep.subr.mxu1 %v2882_v0 }
 0x429   :  { %2415 = vmatpush3.msra.mxu1 %v3357_v16 }
 0x42a   :  { %2416 = vmatprep.subr.mxu1 %v2882_v0 }
 0x42b   :  { %2417 = vmatpush3.msra.mxu1 %v3361_v34 }
 0x42c   :  { %2418 = vmatprep.subr.mxu1 %v2882_v0 }
 0x42d   :  { %2419 = vmatpush3.msra.mxu1 %v3365_v41 }
 0x42e   :  { %2420 = vmatprep.subr.mxu1 %v2882_v0 }
 0x42f   :  { %2421 = vmatpush3.msra.mxu1 %v3369_v48 }
 0x430   :  { %2422 = vmatprep.subr.mxu1 %v2882_v0 }
 0x431   :  { %2423 = vmatpush3.msra.mxu1 %v3415_v39 }
 0x432   :  { %2424 = vmatprep.subr.mxu1 %v2882_v0 }
 0x433   :  { %2425 = vmatpush3.msra.mxu1 %v3419_v42 }
 0x434   :  { %2426 = vmatprep.subr.mxu1 %v2882_v0 }
 0x435   :  { %2427 = vmatpush3.msra.mxu1 %v3423_v46 }
 0x436   :  { %2428 = vmatprep.subr.mxu1 %v2882_v0 }
 0x437   :  { %2429 = vmatpush3.msra.mxu1 %v3427_v51 }
 0x438   :  { %2430 = vmatprep.subr.mxu1 %v2882_v0 }
 0x439   :  { %2431 = vmatpush3.msra.mxu1 %v3431_v53 }
 0x43a   :  { %2432 = vmatprep.subr.mxu1 %v2882_v0 }
 0x43b   :  { %2433 = vmatpush3.msra.mxu1 %v3435_v54 }
 0x43c   :  { %2434 = vmatprep.subr.mxu1 %v2882_v0 }
 0x43d   :  { %2435 = vmatpush3.msra.mxu1 %v3439_v56 }
 0x43e   :  { %2436 = vmatprep.subr.mxu1 %v2882_v0 }
 0x43f   :  { %2437 = vmatpush3.msra.mxu1 %v3485_v49 }
 0x440   :  { %2476 = vmatprep.subr.mxu1 %v2882_v0 }
 0x4e0   :  { %v845_v1 = vpop.f32.mrf.mxu1 }
 0x4e1   :  { %v849_v32 = vadd.f32 %v845_v1, %v3225_v25 }
 0x4e2   :  { %v2370_v40 = vpop.f32.mrf.mxu1 }
 0x4e3   :  { %v3494_v43 = vsel %vm862_vm9, %v849_v32, %v3450_v28 }
 0x4e4   :  { %2404 = vmatmul.mubr.f32.vlgmr.msra.gmra.mxu0 %v3494_v43 }
 0x4e5   :  { %2442 = vmatpush3.msra.mxu0 %v3339_v18  ;;  %2473 = vmatprep.mubr.msk.f32.mxu0 %vm2883_vm0, %v2882_v0 }
 0x4e6   :  { %2443 = vmatprep.subr.mxu0 %v2882_v0 }
 0x4e7   :  { %2444 = vmatpush3.msra.mxu0 %v3345_v21 }
 0x4e8   :  { %2445 = vmatprep.subr.mxu0 %v2882_v0 }
 0x4e9   :  { %2446 = vmatpush3.msra.mxu0 %v3349_v24 }
 0x4ea   :  { %2447 = vmatprep.subr.mxu0 %v2882_v0 }
 0x4eb   :  { %2448 = vmatpush3.msra.mxu0 %v3353_v57 }
 0x4ec   :  { %2449 = vmatprep.subr.mxu0 %v2882_v0 }
 0x4ed   :  { %2450 = vmatpush3.msra.mxu0 %v3357_v16 }
 0x4ee   :  { %2451 = vmatprep.subr.mxu0 %v2882_v0 }
 0x4ef   :  { %2452 = vmatpush3.msra.mxu0 %v3361_v34 }
 0x4f0   :  { %2453 = vmatprep.subr.mxu0 %v2882_v0 }
 0x4f1   :  { %2454 = vmatpush3.msra.mxu0 %v3365_v41 }
 0x4f2   :  { %2455 = vmatprep.subr.mxu0 %v2882_v0 }
 0x4f3   :  { %2456 = vmatpush3.msra.mxu0 %v3369_v48 }
 0x4f4   :  { %2457 = vmatprep.subr.mxu0 %v2882_v0 }
 0x4f5   :  { %2458 = vmatpush3.msra.mxu0 %v3415_v39 }
 0x4f6   :  { %2459 = vmatprep.subr.mxu0 %v2882_v0 }
 0x4f7   :  { %2460 = vmatpush3.msra.mxu0 %v3419_v42 }
 0x4f8   :  { %2461 = vmatprep.subr.mxu0 %v2882_v0 }
 0x4f9   :  { %2462 = vmatpush3.msra.mxu0 %v3423_v46 }
 0x4fa   :  { %2463 = vmatprep.subr.mxu0 %v2882_v0 }
 0x4fb   :  { %2464 = vmatpush3.msra.mxu0 %v3427_v51 }
 0x4fc   :  { %2465 = vmatprep.subr.mxu0 %v2882_v0 }
 0x4fd   :  { %2466 = vmatpush3.msra.mxu0 %v3431_v53 }
 0x4fe   :  { %2467 = vmatprep.subr.mxu0 %v2882_v0 }
 0x4ff   :  { %2468 = vmatpush3.msra.mxu0 %v3435_v54 }
 0x500   :  { %2469 = vmatprep.subr.mxu0 %v2882_v0 }
 0x501   :  { %2470 = vmatpush3.msra.mxu0 %v3439_v56 }
 0x502   :  { %2471 = vmatprep.subr.mxu0 %v2882_v0 }
 0x503   :  { %2472 = vmatpush3.msra.mxu0 %v3485_v49 }
 0x504   :  { %2511 = vmatprep.subr.mxu0 %v2882_v0 }
 0x5a4   :  { %v934_v25 = vpop.f32.mrf.mxu0 }
 0x5a5   :  { %v938_v44 = vadd.f32 %v934_v25, %v3233_v37 }
 0x5a6   :  { %v2405_v4 = vpop.f32.mrf.mxu0 }
 0x5a7   :  { %v3536_v7 = vsel %vm951_vm10, %v938_v44, %v3494_v43 }
 0x5a8   :  { %2439 = vmatmul.mubr.f32.vlgmr.msra.gmra.mxu1 %v3536_v7 }
 0x5a9   :  { %2477 = vmatpush3.msra.mxu1 %v3339_v18  ;;  %2508 = vmatprep.mubr.msk.f32.mxu1 %vm2883_vm0, %v2882_v0 }
 0x5aa   :  { %2478 = vmatprep.subr.mxu1 %v2882_v0 }
 0x5ab   :  { %2479 = vmatpush3.msra.mxu1 %v3345_v21 }
 0x5ac   :  { %2480 = vmatprep.subr.mxu1 %v2882_v0 }
 0x5ad   :  { %2481 = vmatpush3.msra.mxu1 %v3349_v24 }
 0x5ae   :  { %2482 = vmatprep.subr.mxu1 %v2882_v0 }
 0x5af   :  { %2483 = vmatpush3.msra.mxu1 %v3353_v57 }
 0x5b0   :  { %2484 = vmatprep.subr.mxu1 %v2882_v0 }
 0x5b1   :  { %2485 = vmatpush3.msra.mxu1 %v3357_v16 }
 0x5b2   :  { %2486 = vmatprep.subr.mxu1 %v2882_v0 }
 0x5b3   :  { %2487 = vmatpush3.msra.mxu1 %v3361_v34 }
 0x5b4   :  { %2488 = vmatprep.subr.mxu1 %v2882_v0 }
 0x5b5   :  { %2489 = vmatpush3.msra.mxu1 %v3365_v41 }
 0x5b6   :  { %2490 = vmatprep.subr.mxu1 %v2882_v0 }
 0x5b7   :  { %2491 = vmatpush3.msra.mxu1 %v3369_v48 }
 0x5b8   :  { %2492 = vmatprep.subr.mxu1 %v2882_v0 }
 0x5b9   :  { %2493 = vmatpush3.msra.mxu1 %v3415_v39 }
 0x5ba   :  { %2494 = vmatprep.subr.mxu1 %v2882_v0 }
 0x5bb   :  { %2495 = vmatpush3.msra.mxu1 %v3419_v42 }
 0x5bc   :  { %2496 = vmatprep.subr.mxu1 %v2882_v0 }
 0x5bd   :  { %2497 = vmatpush3.msra.mxu1 %v3423_v46 }
 0x5be   :  { %2498 = vmatprep.subr.mxu1 %v2882_v0 }
 0x5bf   :  { %2499 = vmatpush3.msra.mxu1 %v3427_v51 }
 0x5c0   :  { %2500 = vmatprep.subr.mxu1 %v2882_v0 }
 0x5c1   :  { %2501 = vmatpush3.msra.mxu1 %v3431_v53 }
 0x5c2   :  { %2502 = vmatprep.subr.mxu1 %v2882_v0 }
 0x5c3   :  { %2503 = vmatpush3.msra.mxu1 %v3435_v54 }
 0x5c4   :  { %2504 = vmatprep.subr.mxu1 %v2882_v0 }
 0x5c5   :  { %2505 = vmatpush3.msra.mxu1 %v3439_v56 }
 0x5c6   :  { %2506 = vmatprep.subr.mxu1 %v2882_v0 }
 0x5c7   :  { %2507 = vmatpush3.msra.mxu1 %v3485_v49 }
 0x5c8   :  { %2546 = vmatprep.subr.mxu1 %v2882_v0 }
 0x668   :  { %v1023_v37 = vpop.f32.mrf.mxu1 }
 0x669   :  { %v1027_v9 = vadd.f32 %v1023_v37, %v3241_v47 }
 0x66a   :  { %v2440_v12 = vpop.f32.mrf.mxu1 }
 0x66b   :  { %v3578_v27 = vsel %vm1040_vm11, %v1027_v9, %v3536_v7 }
 0x66c   :  { %2474 = vmatmul.mubr.f32.vlgmr.msra.gmra.mxu0 %v3578_v27 }
 0x66d   :  { %2512 = vmatpush3.msra.mxu0 %v3339_v18  ;;  %2543 = vmatprep.mubr.msk.f32.mxu0 %vm2883_vm0, %v2882_v0 }
 0x66e   :  { %2513 = vmatprep.subr.mxu0 %v2882_v0 }
 0x66f   :  { %2514 = vmatpush3.msra.mxu0 %v3345_v21 }
 0x670   :  { %2515 = vmatprep.subr.mxu0 %v2882_v0 }
 0x671   :  { %2516 = vmatpush3.msra.mxu0 %v3349_v24 }
 0x672   :  { %2517 = vmatprep.subr.mxu0 %v2882_v0 }
 0x673   :  { %2518 = vmatpush3.msra.mxu0 %v3353_v57 }
 0x674   :  { %2519 = vmatprep.subr.mxu0 %v2882_v0 }
 0x675   :  { %2520 = vmatpush3.msra.mxu0 %v3357_v16 }
 0x676   :  { %2521 = vmatprep.subr.mxu0 %v2882_v0 }
 0x677   :  { %2522 = vmatpush3.msra.mxu0 %v3361_v34 }
 0x678   :  { %2523 = vmatprep.subr.mxu0 %v2882_v0 }
 0x679   :  { %2524 = vmatpush3.msra.mxu0 %v3365_v41 }
 0x67a   :  { %2525 = vmatprep.subr.mxu0 %v2882_v0 }
 0x67b   :  { %2526 = vmatpush3.msra.mxu0 %v3369_v48 }
 0x67c   :  { %2527 = vmatprep.subr.mxu0 %v2882_v0 }
 0x67d   :  { %2528 = vmatpush3.msra.mxu0 %v3415_v39 }
 0x67e   :  { %2529 = vmatprep.subr.mxu0 %v2882_v0 }
 0x67f   :  { %2530 = vmatpush3.msra.mxu0 %v3419_v42 }
 0x680   :  { %2531 = vmatprep.subr.mxu0 %v2882_v0 }
 0x681   :  { %2532 = vmatpush3.msra.mxu0 %v3423_v46 }
 0x682   :  { %2533 = vmatprep.subr.mxu0 %v2882_v0 }
 0x683   :  { %2534 = vmatpush3.msra.mxu0 %v3427_v51 }
 0x684   :  { %2535 = vmatprep.subr.mxu0 %v2882_v0 }
 0x685   :  { %2536 = vmatpush3.msra.mxu0 %v3431_v53 }
 0x686   :  { %2537 = vmatprep.subr.mxu0 %v2882_v0 }
 0x687   :  { %2538 = vmatpush3.msra.mxu0 %v3435_v54 }
 0x688   :  { %2539 = vmatprep.subr.mxu0 %v2882_v0 }
 0x689   :  { %2540 = vmatpush3.msra.mxu0 %v3439_v56 }
 0x68a   :  { %2541 = vmatprep.subr.mxu0 %v2882_v0 }
 0x68b   :  { %2542 = vmatpush3.msra.mxu0 %v3485_v49 }
 0x68c   :  { %2581 = vmatprep.subr.mxu0 %v2882_v0 }
 0x72c   :  { %v1112_v47 = vpop.f32.mrf.mxu0 }
 0x72d   :  { %v1116_v30 = vadd.f32 %v1112_v47, %v3249_v55 }
 0x72e   :  { %v2475_v33 = vpop.f32.mrf.mxu0 }
 0x72f   :  { %v3620_v20 = vsel %vm1129_vm12, %v1116_v30, %v3578_v27  ;;  %v1756_v30 = vld [vmem:[#allocation8 + $0x18] sm:$0xff]  ;;  %v1755_v33 = vld [vmem:[#allocation8 + $0x8] sm:$0xff] }
 0x730   :  { %2509 = vmatmul.mubr.f32.vlgmr.msra.gmra.mxu1 %v3620_v20 }
 0x731   :  { %2547 = vmatpush3.msra.mxu1 %v3339_v18  ;;  %2578 = vmatprep.mubr.msk.f32.mxu1 %vm2883_vm0, %v2882_v0 }
 0x732   :  { %2548 = vmatprep.subr.mxu1 %v2882_v0 }
 0x733   :  { %2549 = vmatpush3.msra.mxu1 %v3345_v21 }
 0x734   :  { %2550 = vmatprep.subr.mxu1 %v2882_v0 }
 0x735   :  { %2551 = vmatpush3.msra.mxu1 %v3349_v24 }
 0x736   :  { %2552 = vmatprep.subr.mxu1 %v2882_v0 }
 0x737   :  { %2553 = vmatpush3.msra.mxu1 %v3353_v57 }
 0x738   :  { %2554 = vmatprep.subr.mxu1 %v2882_v0 }
 0x739   :  { %2555 = vmatpush3.msra.mxu1 %v3357_v16 }
 0x73a   :  { %2556 = vmatprep.subr.mxu1 %v2882_v0 }
 0x73b   :  { %2557 = vmatpush3.msra.mxu1 %v3361_v34 }
 0x73c   :  { %2558 = vmatprep.subr.mxu1 %v2882_v0 }
 0x73d   :  { %2559 = vmatpush3.msra.mxu1 %v3365_v41 }
 0x73e   :  { %2560 = vmatprep.subr.mxu1 %v2882_v0 }
 0x73f   :  { %2561 = vmatpush3.msra.mxu1 %v3369_v48 }
 0x740   :  { %2562 = vmatprep.subr.mxu1 %v2882_v0 }
 0x741   :  { %2563 = vmatpush3.msra.mxu1 %v3415_v39 }
 0x742   :  { %2564 = vmatprep.subr.mxu1 %v2882_v0 }
 0x743   :  { %2565 = vmatpush3.msra.mxu1 %v3419_v42 }
 0x744   :  { %2566 = vmatprep.subr.mxu1 %v2882_v0 }
 0x745   :  { %2567 = vmatpush3.msra.mxu1 %v3423_v46 }
 0x746   :  { %2568 = vmatprep.subr.mxu1 %v2882_v0 }
 0x747   :  { %2569 = vmatpush3.msra.mxu1 %v3427_v51 }
 0x748   :  { %2570 = vmatprep.subr.mxu1 %v2882_v0 }
 0x749   :  { %2571 = vmatpush3.msra.mxu1 %v3431_v53 }
 0x74a   :  { %2572 = vmatprep.subr.mxu1 %v2882_v0 }
 0x74b   :  { %2573 = vmatpush3.msra.mxu1 %v3435_v54 }
 0x74c   :  { %2574 = vmatprep.subr.mxu1 %v2882_v0 }
 0x74d   :  { %2575 = vmatpush3.msra.mxu1 %v3439_v56 }
 0x74e   :  { %2576 = vmatprep.subr.mxu1 %v2882_v0 }
 0x74f   :  { %2577 = vmatpush3.msra.mxu1 %v3485_v49 }
 0x750   :  { %2616 = vmatprep.subr.mxu1 %v2882_v0 }
 0x7f0   :  { %v1201_v55 = vpop.f32.mrf.mxu1 }
 0x7f1   :  { %v1205_v59 = vadd.f32 %v1201_v55, %v3257_v23  ;;  %v507_v55 = vsel %vm506_vm5, %v3193_v35, 0.0 }
 0x7f2   :  { %v2510_v26 = vpop.f32.mrf.mxu1 }
 0x7f3   :  { %v3662_v1 = vsel %vm1218_vm13, %v1205_v59, %v3620_v20  ;;  %v596_v59 = vsel %vm595_vm6, %v3293_v45, %v507_v55 }
 0x7f4   :  { %2544 = vmatmul.mubr.f32.vlgmr.msra.gmra.mxu0 %v3662_v1  ;;  %v685_v26 = vsel %vm684_vm7, %v3336_v15, %v596_v59 }
 0x7f5   :  { %2582 = vmatpush3.msra.mxu0 %v3339_v18  ;;  %2613 = vmatprep.mubr.msk.f32.mxu0 %vm2883_vm0, %v2882_v0 }
 0x7f6   :  { %2583 = vmatprep.subr.mxu0 %v2882_v0 }
 0x7f7   :  { %2584 = vmatpush3.msra.mxu0 %v3345_v21 }
 0x7f8   :  { %2585 = vmatprep.subr.mxu0 %v2882_v0 }
 0x7f9   :  { %2586 = vmatpush3.msra.mxu0 %v3349_v24 }
 0x7fa   :  { %2587 = vmatprep.subr.mxu0 %v2882_v0 }
 0x7fb   :  { %2588 = vmatpush3.msra.mxu0 %v3353_v57 }
 0x7fc   :  { %2589 = vmatprep.subr.mxu0 %v2882_v0 }
 0x7fd   :  { %2590 = vmatpush3.msra.mxu0 %v3357_v16 }
 0x7fe   :  { %2591 = vmatprep.subr.mxu0 %v2882_v0 }
 0x7ff   :  { %2592 = vmatpush3.msra.mxu0 %v3361_v34 }
 0x800   :  { %2593 = vmatprep.subr.mxu0 %v2882_v0 }
 0x801   :  { %2594 = vmatpush3.msra.mxu0 %v3365_v41 }
 0x802   :  { %2595 = vmatprep.subr.mxu0 %v2882_v0 }
 0x803   :  { %2596 = vmatpush3.msra.mxu0 %v3369_v48 }
 0x804   :  { %2597 = vmatprep.subr.mxu0 %v2882_v0 }
 0x805   :  { %2598 = vmatpush3.msra.mxu0 %v3415_v39 }
 0x806   :  { %2599 = vmatprep.subr.mxu0 %v2882_v0 }
 0x807   :  { %2600 = vmatpush3.msra.mxu0 %v3419_v42 }
 0x808   :  { %2601 = vmatprep.subr.mxu0 %v2882_v0 }
 0x809   :  { %2602 = vmatpush3.msra.mxu0 %v3423_v46 }
 0x80a   :  { %2603 = vmatprep.subr.mxu0 %v2882_v0 }
 0x80b   :  { %2604 = vmatpush3.msra.mxu0 %v3427_v51 }
 0x80c   :  { %2605 = vmatprep.subr.mxu0 %v2882_v0 }
 0x80d   :  { %2606 = vmatpush3.msra.mxu0 %v3431_v53 }
 0x80e   :  { %2607 = vmatprep.subr.mxu0 %v2882_v0 }
 0x80f   :  { %2608 = vmatpush3.msra.mxu0 %v3435_v54 }
 0x810   :  { %2609 = vmatprep.subr.mxu0 %v2882_v0 }
 0x811   :  { %2610 = vmatpush3.msra.mxu0 %v3439_v56 }
 0x812   :  { %2611 = vmatprep.subr.mxu0 %v2882_v0 }
 0x813   :  { %2612 = vmatpush3.msra.mxu0 %v3485_v49 }
 0x814   :  { %2651 = vmatprep.subr.mxu0 %v2882_v0 }
 0x8b4   :  { %v1290_v23 = vpop.f32.mrf.mxu0 }
 0x8b5   :  { %v1294_v32 = vadd.f32 %v1290_v23, %v3262_v38  ;;  %v774_v23 = vsel %vm773_vm8, %v3394_v36, %v685_v26 }
 0x8b6   :  { %v2545_v40 = vpop.f32.mrf.mxu0 }
 0x8b7   :  { %v3704_v25 = vsel %vm1307_vm14, %v1294_v32, %v3662_v1 }
 0x8b8   :  { %2579 = vmatmul.mubr.f32.vlgmr.msra.gmra.mxu1 %v3704_v25 }
 0x8b9   :  { %2617 = vmatpush3.msra.mxu1 %v3339_v18  ;;  %2648 = vmatprep.mubr.msk.f32.mxu1 %vm2883_vm0, %v2882_v0 }
 0x8ba   :  { %2618 = vmatprep.subr.mxu1 %v2882_v0 }
 0x8bb   :  { %2619 = vmatpush3.msra.mxu1 %v3345_v21 }
 0x8bc   :  { %2620 = vmatprep.subr.mxu1 %v2882_v0 }
 0x8bd   :  { %2621 = vmatpush3.msra.mxu1 %v3349_v24 }
 0x8be   :  { %2622 = vmatprep.subr.mxu1 %v2882_v0 }
 0x8bf   :  { %2623 = vmatpush3.msra.mxu1 %v3353_v57 }
 0x8c0   :  { %2624 = vmatprep.subr.mxu1 %v2882_v0 }
 0x8c1   :  { %2625 = vmatpush3.msra.mxu1 %v3357_v16 }
 0x8c2   :  { %2626 = vmatprep.subr.mxu1 %v2882_v0 }
 0x8c3   :  { %2627 = vmatpush3.msra.mxu1 %v3361_v34 }
 0x8c4   :  { %2628 = vmatprep.subr.mxu1 %v2882_v0 }
 0x8c5   :  { %2629 = vmatpush3.msra.mxu1 %v3365_v41 }
 0x8c6   :  { %2630 = vmatprep.subr.mxu1 %v2882_v0 }
 0x8c7   :  { %2631 = vmatpush3.msra.mxu1 %v3369_v48 }
 0x8c8   :  { %2632 = vmatprep.subr.mxu1 %v2882_v0 }
 0x8c9   :  { %2633 = vmatpush3.msra.mxu1 %v3415_v39 }
 0x8ca   :  { %2634 = vmatprep.subr.mxu1 %v2882_v0 }
 0x8cb   :  { %2635 = vmatpush3.msra.mxu1 %v3419_v42 }
 0x8cc   :  { %2636 = vmatprep.subr.mxu1 %v2882_v0 }
 0x8cd   :  { %2637 = vmatpush3.msra.mxu1 %v3423_v46 }
 0x8ce   :  { %2638 = vmatprep.subr.mxu1 %v2882_v0 }
 0x8cf   :  { %2639 = vmatpush3.msra.mxu1 %v3427_v51 }
 0x8d0   :  { %2640 = vmatprep.subr.mxu1 %v2882_v0 }
 0x8d1   :  { %2641 = vmatpush3.msra.mxu1 %v3431_v53 }
 0x8d2   :  { %2642 = vmatprep.subr.mxu1 %v2882_v0 }
 0x8d3   :  { %2643 = vmatpush3.msra.mxu1 %v3435_v54 }
 0x8d4   :  { %2644 = vmatprep.subr.mxu1 %v2882_v0 }
 0x8d5   :  { %2645 = vmatpush3.msra.mxu1 %v3439_v56 }
 0x8d6   :  { %2646 = vmatprep.subr.mxu1 %v2882_v0 }
 0x8d7   :  { %2647 = vmatpush3.msra.mxu1 %v3485_v49 }
 0x8d8   :  { %2686 = vmatprep.subr.mxu1 %v2882_v0 }
 0x978   :  { %v1379_v38 = vpop.f32.mrf.mxu1 }
 0x979   :  { %v1383_v44 = vadd.f32 %v1379_v38, %v3266_v50 }
 0x97a   :  { %v2580_v4 = vpop.f32.mrf.mxu1 }
 0x97b   :  { %v3746_v37 = vsel %vm1396_vm15, %v1383_v44, %v3704_v25 }
 0x97c   :  { %2614 = vmatmul.mubr.f32.vlgmr.msra.gmra.mxu0 %v3746_v37 }
 0x97d   :  { %2652 = vmatpush3.msra.mxu0 %v3339_v18  ;;  %2683 = vmatprep.mubr.msk.f32.mxu0 %vm2883_vm0, %v2882_v0 }
 0x97e   :  { %2653 = vmatprep.subr.mxu0 %v2882_v0 }
 0x97f   :  { %2654 = vmatpush3.msra.mxu0 %v3345_v21 }
 0x980   :  { %2655 = vmatprep.subr.mxu0 %v2882_v0 }
 0x981   :  { %2656 = vmatpush3.msra.mxu0 %v3349_v24 }
 0x982   :  { %2657 = vmatprep.subr.mxu0 %v2882_v0 }
 0x983   :  { %2658 = vmatpush3.msra.mxu0 %v3353_v57 }
 0x984   :  { %2659 = vmatprep.subr.mxu0 %v2882_v0 }
 0x985   :  { %2660 = vmatpush3.msra.mxu0 %v3357_v16 }
 0x986   :  { %2661 = vmatprep.subr.mxu0 %v2882_v0 }
 0x987   :  { %2662 = vmatpush3.msra.mxu0 %v3361_v34 }
 0x988   :  { %2663 = vmatprep.subr.mxu0 %v2882_v0 }
 0x989   :  { %2664 = vmatpush3.msra.mxu0 %v3365_v41 }
 0x98a   :  { %2665 = vmatprep.subr.mxu0 %v2882_v0 }
 0x98b   :  { %2666 = vmatpush3.msra.mxu0 %v3369_v48 }
 0x98c   :  { %2667 = vmatprep.subr.mxu0 %v2882_v0 }
 0x98d   :  { %2668 = vmatpush3.msra.mxu0 %v3415_v39 }
 0x98e   :  { %2669 = vmatprep.subr.mxu0 %v2882_v0 }
 0x98f   :  { %2670 = vmatpush3.msra.mxu0 %v3419_v42 }
 0x990   :  { %2671 = vmatprep.subr.mxu0 %v2882_v0 }
 0x991   :  { %2672 = vmatpush3.msra.mxu0 %v3423_v46 }
 0x992   :  { %2673 = vmatprep.subr.mxu0 %v2882_v0 }
 0x993   :  { %2674 = vmatpush3.msra.mxu0 %v3427_v51 }
 0x994   :  { %2675 = vmatprep.subr.mxu0 %v2882_v0 }
 0x995   :  { %2676 = vmatpush3.msra.mxu0 %v3431_v53 }
 0x996   :  { %2677 = vmatprep.subr.mxu0 %v2882_v0 }
 0x997   :  { %2678 = vmatpush3.msra.mxu0 %v3435_v54 }
 0x998   :  { %2679 = vmatprep.subr.mxu0 %v2882_v0 }
 0x999   :  { %2680 = vmatpush3.msra.mxu0 %v3439_v56 }
 0x99a   :  { %2681 = vmatprep.subr.mxu0 %v2882_v0 }
 0x99b   :  { %2682 = vmatpush3.msra.mxu0 %v3485_v49 }
 0x99c   :  { %2721 = vmatprep.subr.mxu0 %v2882_v0 }
 0xa3c   :  { %v1468_v50 = vpop.f32.mrf.mxu0 }
 0xa3d   :  { %v1472_v9 = vadd.f32 %v1468_v50, %v3270_v14 }
 0xa3e   :  { %v2615_v12 = vpop.f32.mrf.mxu0 }
 0xa3f   :  { %v3788_v47 = vsel %vm1485_vm1, %v1472_v9, %v3746_v37 }
 0xa40   :  { %2649 = vmatmul.mubr.f32.vlgmr.msra.gmra.mxu1 %v3788_v47 }
 0xa41   :  { %2687 = vmatpush3.msra.mxu1 %v3339_v18  ;;  %2718 = vmatprep.mubr.msk.f32.mxu1 %vm2883_vm0, %v2882_v0 }
 0xa42   :  { %2688 = vmatprep.subr.mxu1 %v2882_v0 }
 0xa43   :  { %2689 = vmatpush3.msra.mxu1 %v3345_v21 }
 0xa44   :  { %2690 = vmatprep.subr.mxu1 %v2882_v0 }
 0xa45   :  { %2691 = vmatpush3.msra.mxu1 %v3349_v24  ;;  %v1770_v24 = vld [vmem:[#allocation8 + $0xf8] sm:$0xff] }
 0xa46   :  { %2692 = vmatprep.subr.mxu1 %v2882_v0 }
 0xa47   :  { %2693 = vmatpush3.msra.mxu1 %v3353_v57 }
 0xa48   :  { %2694 = vmatprep.subr.mxu1 %v2882_v0 }
 0xa49   :  { %2695 = vmatpush3.msra.mxu1 %v3357_v16  ;;  %v1769_v16 = vld [vmem:[#allocation8 + $0xe8] sm:$0xff] }
 0xa4a   :  { %2696 = vmatprep.subr.mxu1 %v2882_v0 }
 0xa4b   :  { %2697 = vmatpush3.msra.mxu1 %v3361_v34  ;;  %v1768_v34 = vld [vmem:[#allocation8 + $0xd8] sm:$0xff] }
 0xa4c   :  { %2698 = vmatprep.subr.mxu1 %v2882_v0 }
 0xa4d   :  { %2699 = vmatpush3.msra.mxu1 %v3365_v41  ;;  %v1766_v41 = vld [vmem:[#allocation8 + $0xb8] sm:$0xff] }
 0xa4e   :  { %2700 = vmatprep.subr.mxu1 %v2882_v0 }
 0xa4f   :  { %2701 = vmatpush3.msra.mxu1 %v3369_v48  ;;  %v1765_v48 = vld [vmem:[#allocation8 + $0xa8] sm:$0xff] }
 0xa50   :  { %2702 = vmatprep.subr.mxu1 %v2882_v0 }
 0xa51   :  { %2703 = vmatpush3.msra.mxu1 %v3415_v39  ;;  %v1764_v39 = vld [vmem:[#allocation8 + $0x98] sm:$0xff] }
 0xa52   :  { %2704 = vmatprep.subr.mxu1 %v2882_v0 }
 0xa53   :  { %2705 = vmatpush3.msra.mxu1 %v3419_v42  ;;  %v1763_v42 = vld [vmem:[#allocation8 + $0x88] sm:$0xff] }
 0xa54   :  { %2706 = vmatprep.subr.mxu1 %v2882_v0 }
 0xa55   :  { %2707 = vmatpush3.msra.mxu1 %v3423_v46  ;;  %v1762_v46 = vld [vmem:[#allocation8 + $0x78] sm:$0xff] }
 0xa56   :  { %2708 = vmatprep.subr.mxu1 %v2882_v0 }
 0xa57   :  { %2709 = vmatpush3.msra.mxu1 %v3427_v51  ;;  %v1761_v51 = vld [vmem:[#allocation8 + $0x68] sm:$0xff] }
 0xa58   :  { %2710 = vmatprep.subr.mxu1 %v2882_v0 }
 0xa59   :  { %2711 = vmatpush3.msra.mxu1 %v3431_v53  ;;  %v1760_v53 = vld [vmem:[#allocation8 + $0x58] sm:$0xff] }
 0xa5a   :  { %2712 = vmatprep.subr.mxu1 %v2882_v0 }
 0xa5b   :  { %2713 = vmatpush3.msra.mxu1 %v3435_v54  ;;  %v1759_v54 = vld [vmem:[#allocation8 + $0x48] sm:$0xff] }
 0xa5c   :  { %2714 = vmatprep.subr.mxu1 %v2882_v0 }
 0xa5d   :  { %2715 = vmatpush3.msra.mxu1 %v3439_v56  ;;  %v1758_v56 = vld [vmem:[#allocation8 + $0x38] sm:$0xff] }
 0xa5e   :  { %2716 = vmatprep.subr.mxu1 %v2882_v0 }
 0xa5f   :  { %2717 = vmatpush3.msra.mxu1 %v3485_v49  ;;  %v1757_v49 = vld [vmem:[#allocation8 + $0x28] sm:$0xff] }
 0xb00   :  { %v1557_v14 = vpop.f32.mrf.mxu1 }
 0xb01   :  { %v1561_v18 = vadd.f32 %v1557_v14, %v3274_v31  ;;  %v1767_v31 = vld [vmem:[#allocation8 + $0xc8] sm:$0xff] }
 0xb02   :  { %v2650_v21 = vpop.f32.mrf.mxu1 }
 0xb03   :  { %v3829_v57 = vsel %vm1574_vm2, %v1561_v18, %v3788_v47 }
 0xb04   :  { %2684 = vmatmul.mubr.f32.vlgmr.msra.gmra.mxu0 %v3829_v57 }
 0xb05   :  { %2722 = vmatpush3.msra.mxu0 %v1770_v24  ;;  %2753 = vmatprep.mubr.msk.f32.mxu0 %vm2883_vm0, %v2882_v0  ;;  %vm1663_vm0 = vcmp.eq.s32.totalorder %v3187_v19, 1 }
 0xb06   :  { %2723 = vmatprep.subr.mxu0 %v2882_v0 }
 0xb07   :  { %2724 = vmatpush3.msra.mxu0 %v1769_v16 }
 0xb08   :  { %2725 = vmatprep.subr.mxu0 %v2882_v0 }
 0xb09   :  { %2726 = vmatpush3.msra.mxu0 %v1768_v34 }
 0xb0a   :  { %2727 = vmatprep.subr.mxu0 %v2882_v0 }
 0xb0b   :  { %2728 = vmatpush3.msra.mxu0 %v1767_v31 }
 0xb0c   :  { %2729 = vmatprep.subr.mxu0 %v2882_v0 }
 0xb0d   :  { %2730 = vmatpush3.msra.mxu0 %v1766_v41 }
 0xb0e   :  { %2731 = vmatprep.subr.mxu0 %v2882_v0 }
 0xb0f   :  { %2732 = vmatpush3.msra.mxu0 %v1765_v48 }
 0xb10   :  { %2733 = vmatprep.subr.mxu0 %v2882_v0 }
 0xb11   :  { %2734 = vmatpush3.msra.mxu0 %v1764_v39 }
 0xb12   :  { %2735 = vmatprep.subr.mxu0 %v2882_v0 }
 0xb13   :  { %2736 = vmatpush3.msra.mxu0 %v1763_v42 }
 0xb14   :  { %2737 = vmatprep.subr.mxu0 %v2882_v0 }
 0xb15   :  { %2738 = vmatpush3.msra.mxu0 %v1762_v46 }
 0xb16   :  { %2739 = vmatprep.subr.mxu0 %v2882_v0 }
 0xb17   :  { %2740 = vmatpush3.msra.mxu0 %v1761_v51 }
 0xb18   :  { %2741 = vmatprep.subr.mxu0 %v2882_v0 }
 0xb19   :  { %2742 = vmatpush3.msra.mxu0 %v1760_v53 }
 0xb1a   :  { %2743 = vmatprep.subr.mxu0 %v2882_v0 }
 0xb1b   :  { %2744 = vmatpush3.msra.mxu0 %v1759_v54 }
 0xb1c   :  { %2745 = vmatprep.subr.mxu0 %v2882_v0 }
 0xb1d   :  { %2746 = vmatpush3.msra.mxu0 %v1758_v56 }
 0xb1e   :  { %2747 = vmatprep.subr.mxu0 %v2882_v0 }
 0xb1f   :  { %2748 = vmatpush3.msra.mxu0 %v1757_v49 }
 0xb20   :  { %2749 = vmatprep.subr.mxu0 %v2882_v0 }
 0xb21   :  { %2750 = vmatpush3.msra.mxu0 %v1756_v30 }
 0xb22   :  { %2751 = vmatprep.subr.mxu0 %v2882_v0  ;;  %v863_v0 = vsel %vm862_vm9, %v3450_v28, %v774_v23 }
 0xb23   :  { %2752 = vmatpush3.msra.mxu0 %v1755_v33  ;;  %v952_v61 = vsel %vm951_vm10, %v3494_v43, %v863_v0 }
 0xb24   :  { %v1041_v58 = vsel %vm1040_vm11, %v3536_v7, %v952_v61 }
 0xb25   :  { %v1130_v60 = vsel %vm1129_vm12, %v3578_v27, %v1041_v58 }
 0xb26   :  { %v1219_v63 = vsel %vm1218_vm13, %v3620_v20, %v1130_v60 }
 0xb27   :  { %v1308_v62 = vsel %vm1307_vm14, %v3662_v1, %v1219_v63 }
 0xb28   :  { %v1397_v3 = vsel %vm1396_vm15, %v3704_v25, %v1308_v62 }
 0xb29   :  { %v1486_v2 = vsel %vm1485_vm1, %v3746_v37, %v1397_v3 }
 0xb2a   :  { %v1575_v5 = vsel %vm1574_vm2, %v3788_v47, %v1486_v2 }
 0xb2b   :  { %v1664_v8 = vsel %vm1663_vm0, %v3829_v57, %v1575_v5 }
 0xbc4   :  { %v1646_v35 = vpop.f32.mrf.mxu0 }
 0xbc5   :  { %v1650_v6 = vadd.f32 %v1646_v35, %v3278_v52 }
 0xbc6   :  { %v2685_v45 = vpop.f32.mrf.mxu0 }
 0xbc7   :  { %v1665_v10 = vsel %vm1663_vm0, %v1650_v6, %v3829_v57 }
 0xbc8   :  { %2719 = vmatmul.mubr.f32.vlgmr.msra.gmra.mxu1 %v1665_v10  ;;  %v1753_v15 = vsel %vm1752_vm3, %v1665_v10, %v1664_v8 }
 0xbc9   :  { %2754 = vmatmul.mubr.f32.vlgmr.msra.gmra.mxu0 %v1753_v15 }
 0xc88   :  { %v1735_v13 = vpop.f32.mrf.mxu1 }
 0xc89   :  { %v1739_v36 = vadd.f32 %v1735_v13, %v3282_v22  ;;  %v1837_v52 = vpop.f32.mrf.mxu0 }
 0xc8a   :  { %v1841_v19 = vadd.f32 %v1837_v52, %v3285_v29  ;;  %v2720_v28 = vpop.f32.mrf.mxu1 }
 0xc8b   :  { %v2755_v43 = vpop.f32.mrf.mxu0  ;;  %v1754_v11 = vsel %vm1752_vm3, %v1739_v36, %v1665_v10 }
 0xc8c   :  { %1842 = vmax.xlane.f32.xlu0 %v1841_v19  ;;  %1851 = vst [vmem:[#allocation9] sm:$0xff] %v1754_v11 }
 0xd15   :  { %v1843_v7 = vpop.xlane.xlu0 %1842 }
 0xd16   :  { %v1844_v17 = vsub.f32 %v1841_v19, %v1843_v7 }
 0xd18   :  { %v1845_v27 = vmul.f32 1.442695, %v1844_v17 }
 0xd1a   :  { %2769 = vpow2.f32 %v1845_v27 }
 0xd27   :  { %v2770_v20 = vpop.eup %2769 }
 0xd28   :  { %1847 = vadd.xlane.f32.xlu1 %v2770_v20 }
 0xdb1   :  { %v1848_v1 = vpop.xlane.xlu1 %1847 }
 0xdb2   :  { %2771 = vlog2.f32 %v1848_v1 }
 0xdbf   :  { %v2772_v32 = vpop.eup %2771 }
 0xdc0   :  { %v1850_v22 = vmul.f32 0.6931472, %v2772_v32 }
 0xdc2   :  { %v1852_v40 = vsub.f32 %v1844_v17, %v1850_v22 }
 0xdc4   :  { %1853 = vst [vmem:[#allocation9 + $0x8] sm:$0xff] %v1852_v40 }
 0xdc5   :  { %2860 = shalt.err (!%p2857_p5)
}
 0xdc6   :  { %1863 = dma.vmem_to_hbm [thread:$0]  %s1861_s12, 256, %s3903_s5, [#allocation5]  }
 0xdc7   :  { %2873 = dma.done.wait [#allocation5], 256  }
 0xdc8   :  { %2874 = vsyncadd [#allocation5], 4294967040 }
 0xdc9   :  { %1867 = vsyncpa [#allocation4], 1 }
 0xdca   :  { %1868 = vsyncpa [#allocation7], 1 }
 0xdcb   :  { %1869 = vsyncpa [#allocation5], 1 }

</bundles_post_ra>
